<compile_context>
chip_gen: v6e
topology: v6e:2x2x1
jax: 0.10.0
libtpu: 0.0.40
codegen_flags: <defaults>
</compile_context>

<pallas_src>
import jax
import jax.numpy as jnp
from jax import lax
from jax.experimental import pallas as pl
from jax.experimental.pallas import tpu as pltpu


def rnn_kernel(x_ref, wih_ref, b_ref, whh_ref, wp_ref, bp_ref, out_ref,
               h_scratch, proj_scratch):
    """One (batch block, time chunk) grid step of the Elman RNN + linear head.

    x_ref       : (Tc, Bc, I)   time-major input chunk
    wih_ref     : (I, Hp)  = W_ih^T  (zero-padded to lane-dense Hp)
    b_ref       : (1, Hp)  = b_ih + b_hh (padded)
    whh_ref     : (Hp, Hp) = W_hh^T  (padded)
    wp_ref      : (Hp, O)  = W_pred^T (padded rows)
    bp_ref      : (1, O)
    out_ref     : (Bc, O)   written only on the last time chunk
    h_scratch   : (Bc, Hp)  f32 hidden state, persistent across time chunks
    proj_scratch: (Tc, Bc, Hp) f32 time-major projected inputs for this chunk
    """
    t_blk = pl.program_id(1)

    @pl.when(t_blk == 0)
    def _():
        h_scratch[...] = jnp.zeros_like(h_scratch)

    Tc, Bc, I = x_ref.shape
    Hp = whh_ref.shape[1]
    w_dtype = whh_ref.dtype

    # (1) Hoisted input projection: one tall (Tc*Bc, I) @ (I, Hp) MXU matmul per
    #     chunk, bias folded in once, stored TIME-MAJOR so each recurrence step
    #     indexes the leading (untiled) axis of a VMEM scratch -- a free slice,
    #     no per-step sublane relayout copies on the serial critical path.
    x_flat = x_ref[...].reshape(Tc * Bc, I)
    proj = (jnp.dot(x_flat, wih_ref[...], preferred_element_type=jnp.float32)
            + b_ref[...])
    proj_scratch[...] = proj.reshape(Tc, Bc, Hp)

    # (2) Serial recurrence: only the unavoidable h @ W_hh dependency remains.
    #     fori_loop with modest unroll keeps LLO scheduling visibility while
    #     bounding vreg pressure / compile time for larger Tc.  (Mosaic keeps
    #     the constant (Hp,Hp) RHS resident across the unrolled steps; explicit
    #     matmul_push_rhs driving not needed here.)
    def step(t, h):
        return jnp.tanh(proj_scratch[t]
                        + jnp.dot(h.astype(w_dtype), whh_ref[...],
                                  preferred_element_type=jnp.float32))

    h = lax.fori_loop(0, Tc, step, h_scratch[...], unroll=min(Tc, 8))
    h_scratch[...] = h

    # (3) Prediction head only after the final time chunk.
    @pl.when(t_blk == pl.num_programs(1) - 1)
    def _():
        out_ref[...] = (jnp.dot(h.astype(wp_ref.dtype), wp_ref[...],
                                preferred_element_type=jnp.float32)
                        + bp_ref[...])


def _round_up(n, m):
    return ((n + m - 1) // m) * m


def _tpu_caps():
    """(per-core VMEM bytes, TensorCores per chip) with safe fallbacks."""
    vmem_bytes = 64 * (1 << 20)          # conservative default (v7x per-TC)
    num_cores = 1
    try:
        info = pltpu.get_tpu_info()
        vmem_bytes = int(getattr(info, "vmem_capacity_bytes", vmem_bytes))
        for name in ("num_tensorcores", "tensorcore_count", "num_cores",
                     "core_count"):
            v = getattr(info, name, None)
            if v:
                num_cores = int(v)
                break
    except Exception:
        pass
    return vmem_bytes, max(num_cores, 1)


def _pick_time_block(T, cap):
    """Largest divisor of T that is <= cap (leading axis: no layout constraint)."""
    return max(d for d in range(1, T + 1) if T % d == 0 and d <= max(cap, 1))


def _pick_batch_block(B, cap, prefer_multiple):
    """Largest layout-legal divisor of B <= cap, preferring nb = B/Bc to be a
    multiple of the TensorCore count (so the 'parallel' axis shards)."""
    cap = max(int(cap), 1)
    # Bc is the sublane dim of the x/out blocks: must be a multiple of 8 or B.
    divs = [d for d in range(1, B + 1)
            if B % d == 0 and d <= cap and (d % 8 == 0 or d == B)]
    if not divs:
        return B                                   # full extent: always legal
    good = [d for d in divs if (B // d) % max(prefer_multiple, 1) == 0]
    return max(good if good else divs)


def rnn_forward(x, w_ih, b_ih, w_hh, b_hh, w_pred, b_pred, *,
                mxu_dtype=jnp.float32):
    """RNN.forward: predict(rep(x)[1]).  x: (B, T, I), batch-first."""
    B, T, I = x.shape
    H = w_hh.shape[0]
    O = w_pred.shape[0]

    # Lane-dense hidden dim: zero-pad H up to a multiple of the 128-lane width.
    Hp = _round_up(H, 128)

    elt = jnp.dtype(mxu_dtype).itemsize
    vmem_cap, num_cores = _tpu_caps()
    budget = int(0.70 * vmem_cap)                  # leave compiler headroom

    # Time chunk: larger chunks amortize per-grid-step overhead (~0.35us) and
    # give bigger, more HBM-efficient x DMAs; cap keeps proj scratch modest.
    Tc = _pick_time_block(T, cap=32)

    # VMEM accounting: weights single-buffered (Buffered(1)), x/out pipelined
    # with 2 buffers, proj/h scratch allocated once.
    w_bytes = (I * Hp + Hp * Hp + Hp * O) * elt + (Hp + O) * 4
    per_row = 2 * Tc * I * elt + Tc * Hp * 4 + Hp * 4 + 2 * O * 4
    max_bc = max((budget - w_bytes) // per_row, 1)

    # Batch block: nb == 1 on single-TC chips (the grid is a serial loop, so
    # splitting batch only multiplies the latency-bound recurrence); on a
    # multi-TC chip prefer nb to be a multiple of the core count.
    Bc = _pick_batch_block(B, cap=max_bc, prefer_multiple=num_cores)
    nb, nt = B // Bc, T // Tc
    # TODO(synk): non-divisor B/T would need pl.cdiv grids + masked tails.

    need = 2 * w_bytes + Bc * per_row       # 2*w: safe even for fallback path
    vmem_limit = int(min(max(int(1.3 * need) + (4 << 20), 16 << 20),
                         int(0.95 * vmem_cap)))

    # Host-side weight prep: transpose once so every step is h @ W on the MXU,
    # pad the hidden dim to Hp, fold the two RNN biases.  bf16 operands (f32
    # accumulate / tanh / h) halve weight+x bytes and ~double MXU rate on
    # v6e/v7x; default stays f32 so exact-tolerance checks pass.
    x_tm = jnp.swapaxes(x, 0, 1).astype(mxu_dtype)                  # (T, B, I)
    wih_t = jnp.zeros((I, Hp), mxu_dtype).at[:, :H].set(w_ih.T.astype(mxu_dtype))
    whh_t = jnp.zeros((Hp, Hp), mxu_dtype).at[:H, :H].set(w_hh.T.astype(mxu_dtype))
    wp_t = jnp.zeros((Hp, O), mxu_dtype).at[:H, :].set(w_pred.T.astype(mxu_dtype))
    b = jnp.zeros((1, Hp), jnp.float32).at[:, :H].set(
        (b_ih + b_hh).astype(jnp.float32))
    bp = b_pred.astype(jnp.float32).reshape(1, O)

    def _call(single_buffer_weights):
        const_kw = (dict(pipeline_mode=pl.Buffered(1))
                    if single_buffer_weights else {})
        in_specs = [
            pl.BlockSpec((Tc, Bc, I), lambda bi, ti: (ti, bi, 0)),       # x
            pl.BlockSpec((I, Hp), lambda bi, ti: (0, 0), **const_kw),    # W_ih^T
            pl.BlockSpec((1, Hp), lambda bi, ti: (0, 0), **const_kw),    # b_ih+b_hh
            pl.BlockSpec((Hp, Hp), lambda bi, ti: (0, 0), **const_kw),   # W_hh^T
            pl.BlockSpec((Hp, O), lambda bi, ti: (0, 0), **const_kw),    # W_pred^T
            pl.BlockSpec((1, O), lambda bi, ti: (0, 0), **const_kw),     # b_pred
        ]
        return pl.pallas_call(
            rnn_kernel,
            out_shape=jax.ShapeDtypeStruct((B, O), jnp.float32),
            grid=(nb, nt),
            in_specs=in_specs,
            out_specs=pl.BlockSpec((Bc, O), lambda bi, ti: (bi, 0)),
            scratch_shapes=[pltpu.VMEM((Bc, Hp), jnp.float32),           # h
                            pltpu.VMEM((Tc, Bc, Hp), jnp.float32)],      # proj
            compiler_params=pltpu.CompilerParams(
                dimension_semantics=("parallel", "arbitrary"),
                vmem_limit_bytes=vmem_limit),
        )(x_tm, wih_t, b, whh_t, wp_t, bp)

    try:
        # Constant-index weights kept in a single VMEM buffer (halves their
        # resident footprint -- matters most on v7x's 64 MiB VMEM).
        return _call(True)
    except Exception:
        # pipeline_mode / Buffered(1) unsupported on this jax build: fall back
        # to default double buffering (identical results, just more VMEM).
        return _call(False)


def rand_orth(key, shape, irange):
    """Deterministic analogue of the module's rand_orth (SVD orthogonalization)."""
    A = jax.random.uniform(key, shape, minval=-irange, maxval=irange,
                           dtype=jnp.float32)
    U, _, Vt = jnp.linalg.svd(A, full_matrices=False)
    return (U @ Vt).astype(jnp.float32)


def make_params(key, input_size, hidden_size, output_size):
    import math
    k1, k2, k3 = jax.random.split(key, 3)
    w_ih = rand_orth(k1, (hidden_size, input_size),
                     math.sqrt(6.0 / (hidden_size + input_size)))
    w_hh = rand_orth(k2, (hidden_size, hidden_size),
                     math.sqrt(6.0 / (2 * hidden_size)))
    w_pred = rand_orth(k3, (output_size, hidden_size),
                       math.sqrt(6.0 / (output_size + hidden_size)))
    b_ih = jnp.zeros((hidden_size,), jnp.float32)
    b_hh = jnp.zeros((hidden_size,), jnp.float32)
    b_pred = jnp.zeros((output_size,), jnp.float32)
    return w_ih, b_ih, w_hh, b_hh, w_pred, b_pred


def rnn_forward_ref(x, w_ih, b_ih, w_hh, b_hh, w_pred, b_pred):
    """Pure-JAX reference of the PyTorch forward."""
    B, T, I = x.shape
    H = w_hh.shape[0]
    h = jnp.zeros((B, H), jnp.float32)
    for t in range(T):
        h = jnp.tanh(x[:, t, :] @ w_ih.T + b_ih + h @ w_hh.T + b_hh)
    return h @ w_pred.T + b_pred


# TODO(synk): target_prop / reverse_layer / jac_reverse_layer / update_reverse
# are training-time target-propagation utilities, not part of forward().

if __name__ == "__main__":
    B, T, I, H, O = 2, 8, 16, 32, 8

    key = jax.random.PRNGKey(0)
    kx, kp = jax.random.split(key)
    x = jax.random.normal(kx, (B, T, I), dtype=jnp.float32)
    params = make_params(kp, I, H, O)

    # Exact (f32-operand) path.
    out = jax.block_until_ready(rnn_forward(x, *params))
    ref = rnn_forward_ref(x, *params)
    assert out.shape == (B, O)
    assert jnp.allclose(out, ref, atol=1e-5, rtol=1e-5), (
        f"max err {jnp.max(jnp.abs(out - ref))}")

    # bf16 MXU-operand path (recommended on v6e/v7x); accumulate/tanh/h stay
    # f32, so only operand rounding differs -- loose smoke-test bound.
    out_bf16 = jax.block_until_ready(
        rnn_forward(x, *params, mxu_dtype=jnp.bfloat16))
    assert out_bf16.shape == (B, O)
    assert bool(jnp.all(jnp.isfinite(out_bf16)))
    assert float(jnp.max(jnp.abs(out_bf16 - ref))) < 0.5

    print("KERNEL_OK")
</pallas_src>

<mosaic_0001>
module attributes {stable_mosaic.version = 11 : i64} {
  func.func @rnn_kernel(%arg0: i32, %arg1: i32, %arg2: memref<8x2x16xf32, #tpu.memory_space<vmem>>, %arg3: memref<16x128xf32, #tpu.memory_space<vmem>>, %arg4: memref<1x128xf32, #tpu.memory_space<vmem>>, %arg5: memref<128x128xf32, #tpu.memory_space<vmem>>, %arg6: memref<128x8xf32, #tpu.memory_space<vmem>>, %arg7: memref<1x8xf32, #tpu.memory_space<vmem>>, %arg8: memref<2x8xf32, #tpu.memory_space<vmem>>, %arg9: memref<2x128xf32, #tpu.memory_space<vmem>>, %arg10: memref<8x2x128xf32, #tpu.memory_space<vmem>>) attributes {dimension_semantics = [#tpu.dimension_semantics<parallel>, #tpu.dimension_semantics<arbitrary>], iteration_bounds = array<i64: 1, 1>, scalar_prefetch = 0 : i64, scratch_operands = 2 : i64, tpu.core_type = #tpu.core_type<tc>, window_params = [{transform_indices = @transform_0, window_bounds = array<i64: 8, 2, 16>}, {pipeline_mode = #tpu.pipeline_mode<synchronous>, transform_indices = @transform_1, window_bounds = array<i64: 16, 128>}, {pipeline_mode = #tpu.pipeline_mode<synchronous>, transform_indices = @transform_2, window_bounds = array<i64: 1, 128>}, {pipeline_mode = #tpu.pipeline_mode<synchronous>, transform_indices = @transform_3, window_bounds = array<i64: 128, 128>}, {pipeline_mode = #tpu.pipeline_mode<synchronous>, transform_indices = @transform_4, window_bounds = array<i64: 128, 8>}, {pipeline_mode = #tpu.pipeline_mode<synchronous>, transform_indices = @transform_5, window_bounds = array<i64: 1, 8>}, {transform_indices = @transform_6, window_bounds = array<i64: 2, 8>}]} {
    %c0_i32 = arith.constant 0 : i32
    %0 = arith.cmpi eq, %arg1, %c0_i32 : i32
    %1 = arith.extui %0 : i1 to i32
    %c0_i32_0 = arith.constant 0 : i32
    %2 = arith.cmpi ne, %1, %c0_i32_0 : i32
    scf.if %2 {
      %cst_57 = arith.constant 0.000000e+00 : f32
      %73 = vector.broadcast %cst_57 : f32 to vector<2x128xf32>
      %c0_58 = arith.constant 0 : index
      %c0_59 = arith.constant 0 : index
      %74 = vector.load %arg9[%c0_58, %c0_59] : memref<2x128xf32, #tpu.memory_space<vmem>>, vector<2x128xf32>
      tpu.vector_store %arg9[%c0_58, %c0_59], %73 {strides = array<i32>} : memref<2x128xf32, #tpu.memory_space<vmem>>, vector<2x128xf32>,
    } else {
    }
    %c0 = arith.constant 0 : index
    %c0_1 = arith.constant 0 : index
    %c0_2 = arith.constant 0 : index
    %3 = vector.load %arg2[%c0, %c0_1, %c0_2] : memref<8x2x16xf32, #tpu.memory_space<vmem>>, vector<8x2x16xf32>
    %4 = vector.shape_cast %3 : vector<8x2x16xf32> to vector<16x16xf32>
    %c0_3 = arith.constant 0 : index
    %c0_4 = arith.constant 0 : index
    %5 = vector.load %arg3[%c0_3, %c0_4] : memref<16x128xf32, #tpu.memory_space<vmem>>, vector<16x128xf32>
    %cst = arith.constant dense<0.000000e+00> : vector<16x128xf32>
    %6 = tpu.matmul %4, %5, %cst {dimension_numbers = #tpu.dot_dimension_numbers<[1], [0], [0], [1], [0, 0, 1, 1], [], []>} : vector<16x16xf32>, vector<16x128xf32>, vector<16x128xf32> -> vector<16x128xf32>
    %c0_5 = arith.constant 0 : index
    %c0_6 = arith.constant 0 : index
    %7 = vector.load %arg4[%c0_5, %c0_6] : memref<1x128xf32, #tpu.memory_space<vmem>>, vector<1x128xf32>
    %8 = vector.broadcast %7 : vector<1x128xf32> to vector<16x128xf32>
    %9 = arith.addf %6, %8 : vector<16x128xf32>
    %10 = vector.shape_cast %9 : vector<16x128xf32> to vector<8x2x128xf32>
    %c0_7 = arith.constant 0 : index
    %c0_8 = arith.constant 0 : index
    %c0_9 = arith.constant 0 : index
    %11 = vector.load %arg10[%c0_7, %c0_8, %c0_9] : memref<8x2x128xf32, #tpu.memory_space<vmem>>, vector<8x2x128xf32>
    tpu.vector_store %arg10[%c0_7, %c0_8, %c0_9], %10 {strides = array<i32>} : memref<8x2x128xf32, #tpu.memory_space<vmem>>, vector<8x2x128xf32>,
    %c0_10 = arith.constant 0 : index
    %c0_11 = arith.constant 0 : index
    %12 = vector.load %arg9[%c0_10, %c0_11] : memref<2x128xf32, #tpu.memory_space<vmem>>, vector<2x128xf32>
    %c0_i32_12 = arith.constant 0 : i32
    %13 = arith.index_cast %c0_i32_12 : i32 to index
    %c0_13 = arith.constant 0 : index
    %c0_14 = arith.constant 0 : index
    %14 = vector.load %arg10[%13, %c0_13, %c0_14] : memref<8x2x128xf32, #tpu.memory_space<vmem>>, vector<1x2x128xf32>
    %15 = vector.shape_cast %14 : vector<1x2x128xf32> to vector<2x128xf32>
    %c0_15 = arith.constant 0 : index
    %c0_16 = arith.constant 0 : index
    %16 = vector.load %arg5[%c0_15, %c0_16] : memref<128x128xf32, #tpu.memory_space<vmem>>, vector<128x128xf32>
    %cst_17 = arith.constant dense<0.000000e+00> : vector<2x128xf32>
    %17 = tpu.matmul %12, %16, %cst_17 {dimension_numbers = #tpu.dot_dimension_numbers<[1], [0], [0], [1], [0, 0, 1, 1], [], []>} : vector<2x128xf32>, vector<128x128xf32>, vector<2x128xf32> -> vector<2x128xf32>
    %18 = arith.addf %15, %17 : vector<2x128xf32>
    %19 = math.tanh %18 : vector<2x128xf32>
    %c1_i32 = arith.constant 1 : i32
    %20 = arith.index_cast %c1_i32 : i32 to index
    %c0_18 = arith.constant 0 : index
    %c0_19 = arith.constant 0 : index
    %21 = vector.load %arg10[%20, %c0_18, %c0_19] : memref<8x2x128xf32, #tpu.memory_space<vmem>>, vector<1x2x128xf32>
    %22 = vector.shape_cast %21 : vector<1x2x128xf32> to vector<2x128xf32>
    %c0_20 = arith.constant 0 : index
    %c0_21 = arith.constant 0 : index
    %23 = vector.load %arg5[%c0_20, %c0_21] : memref<128x128xf32, #tpu.memory_space<vmem>>, vector<128x128xf32>
    %cst_22 = arith.constant dense<0.000000e+00> : vector<2x128xf32>
    %24 = tpu.matmul %19, %23, %cst_22 {dimension_numbers = #tpu.dot_dimension_numbers<[1], [0], [0], [1], [0, 0, 1, 1], [], []>} : vector<2x128xf32>, vector<128x128xf32>, vector<2x128xf32> -> vector<2x128xf32>
    %25 = arith.addf %22, %24 : vector<2x128xf32>
    %26 = math.tanh %25 : vector<2x128xf32>
    %c2_i32 = arith.constant 2 : i32
    %27 = arith.index_cast %c2_i32 : i32 to index
    %c0_23 = arith.constant 0 : index
    %c0_24 = arith.constant 0 : index
    %28 = vector.load %arg10[%27, %c0_23, %c0_24] : memref<8x2x128xf32, #tpu.memory_space<vmem>>, vector<1x2x128xf32>
    %29 = vector.shape_cast %28 : vector<1x2x128xf32> to vector<2x128xf32>
    %c0_25 = arith.constant 0 : index
    %c0_26 = arith.constant 0 : index
    %30 = vector.load %arg5[%c0_25, %c0_26] : memref<128x128xf32, #tpu.memory_space<vmem>>, vector<128x128xf32>
    %cst_27 = arith.constant dense<0.000000e+00> : vector<2x128xf32>
    %31 = tpu.matmul %26, %30, %cst_27 {dimension_numbers = #tpu.dot_dimension_numbers<[1], [0], [0], [1], [0, 0, 1, 1], [], []>} : vector<2x128xf32>, vector<128x128xf32>, vector<2x128xf32> -> vector<2x128xf32>
    %32 = arith.addf %29, %31 : vector<2x128xf32>
    %33 = math.tanh %32 : vector<2x128xf32>
    %c3_i32 = arith.constant 3 : i32
    %34 = arith.index_cast %c3_i32 : i32 to index
    %c0_28 = arith.constant 0 : index
    %c0_29 = arith.constant 0 : index
    %35 = vector.load %arg10[%34, %c0_28, %c0_29] : memref<8x2x128xf32, #tpu.memory_space<vmem>>, vector<1x2x128xf32>
    %36 = vector.shape_cast %35 : vector<1x2x128xf32> to vector<2x128xf32>
    %c0_30 = arith.constant 0 : index
    %c0_31 = arith.constant 0 : index
    %37 = vector.load %arg5[%c0_30, %c0_31] : memref<128x128xf32, #tpu.memory_space<vmem>>, vector<128x128xf32>
    %cst_32 = arith.constant dense<0.000000e+00> : vector<2x128xf32>
    %38 = tpu.matmul %33, %37, %cst_32 {dimension_numbers = #tpu.dot_dimension_numbers<[1], [0], [0], [1], [0, 0, 1, 1], [], []>} : vector<2x128xf32>, vector<128x128xf32>, vector<2x128xf32> -> vector<2x128xf32>
    %39 = arith.addf %36, %38 : vector<2x128xf32>
    %40 = math.tanh %39 : vector<2x128xf32>
    %c4_i32 = arith.constant 4 : i32
    %41 = arith.index_cast %c4_i32 : i32 to index
    %c0_33 = arith.constant 0 : index
    %c0_34 = arith.constant 0 : index
    %42 = vector.load %arg10[%41, %c0_33, %c0_34] : memref<8x2x128xf32, #tpu.memory_space<vmem>>, vector<1x2x128xf32>
    %43 = vector.shape_cast %42 : vector<1x2x128xf32> to vector<2x128xf32>
    %c0_35 = arith.constant 0 : index
    %c0_36 = arith.constant 0 : index
    %44 = vector.load %arg5[%c0_35, %c0_36] : memref<128x128xf32, #tpu.memory_space<vmem>>, vector<128x128xf32>
    %cst_37 = arith.constant dense<0.000000e+00> : vector<2x128xf32>
    %45 = tpu.matmul %40, %44, %cst_37 {dimension_numbers = #tpu.dot_dimension_numbers<[1], [0], [0], [1], [0, 0, 1, 1], [], []>} : vector<2x128xf32>, vector<128x128xf32>, vector<2x128xf32> -> vector<2x128xf32>
    %46 = arith.addf %43, %45 : vector<2x128xf32>
    %47 = math.tanh %46 : vector<2x128xf32>
    %c5_i32 = arith.constant 5 : i32
    %48 = arith.index_cast %c5_i32 : i32 to index
    %c0_38 = arith.constant 0 : index
    %c0_39 = arith.constant 0 : index
    %49 = vector.load %arg10[%48, %c0_38, %c0_39] : memref<8x2x128xf32, #tpu.memory_space<vmem>>, vector<1x2x128xf32>
    %50 = vector.shape_cast %49 : vector<1x2x128xf32> to vector<2x128xf32>
    %c0_40 = arith.constant 0 : index
    %c0_41 = arith.constant 0 : index
    %51 = vector.load %arg5[%c0_40, %c0_41] : memref<128x128xf32, #tpu.memory_space<vmem>>, vector<128x128xf32>
    %cst_42 = arith.constant dense<0.000000e+00> : vector<2x128xf32>
    %52 = tpu.matmul %47, %51, %cst_42 {dimension_numbers = #tpu.dot_dimension_numbers<[1], [0], [0], [1], [0, 0, 1, 1], [], []>} : vector<2x128xf32>, vector<128x128xf32>, vector<2x128xf32> -> vector<2x128xf32>
    %53 = arith.addf %50, %52 : vector<2x128xf32>
    %54 = math.tanh %53 : vector<2x128xf32>
    %c6_i32 = arith.constant 6 : i32
    %55 = arith.index_cast %c6_i32 : i32 to index
    %c0_43 = arith.constant 0 : index
    %c0_44 = arith.constant 0 : index
    %56 = vector.load %arg10[%55, %c0_43, %c0_44] : memref<8x2x128xf32, #tpu.memory_space<vmem>>, vector<1x2x128xf32>
    %57 = vector.shape_cast %56 : vector<1x2x128xf32> to vector<2x128xf32>
    %c0_45 = arith.constant 0 : index
    %c0_46 = arith.constant 0 : index
    %58 = vector.load %arg5[%c0_45, %c0_46] : memref<128x128xf32, #tpu.memory_space<vmem>>, vector<128x128xf32>
    %cst_47 = arith.constant dense<0.000000e+00> : vector<2x128xf32>
    %59 = tpu.matmul %54, %58, %cst_47 {dimension_numbers = #tpu.dot_dimension_numbers<[1], [0], [0], [1], [0, 0, 1, 1], [], []>} : vector<2x128xf32>, vector<128x128xf32>, vector<2x128xf32> -> vector<2x128xf32>
    %60 = arith.addf %57, %59 : vector<2x128xf32>
    %61 = math.tanh %60 : vector<2x128xf32>
    %c7_i32 = arith.constant 7 : i32
    %62 = arith.index_cast %c7_i32 : i32 to index
    %c0_48 = arith.constant 0 : index
    %c0_49 = arith.constant 0 : index
    %63 = vector.load %arg10[%62, %c0_48, %c0_49] : memref<8x2x128xf32, #tpu.memory_space<vmem>>, vector<1x2x128xf32>
    %64 = vector.shape_cast %63 : vector<1x2x128xf32> to vector<2x128xf32>
    %c0_50 = arith.constant 0 : index
    %c0_51 = arith.constant 0 : index
    %65 = vector.load %arg5[%c0_50, %c0_51] : memref<128x128xf32, #tpu.memory_space<vmem>>, vector<128x128xf32>
    %cst_52 = arith.constant dense<0.000000e+00> : vector<2x128xf32>
    %66 = tpu.matmul %61, %65, %cst_52 {dimension_numbers = #tpu.dot_dimension_numbers<[1], [0], [0], [1], [0, 0, 1, 1], [], []>} : vector<2x128xf32>, vector<128x128xf32>, vector<2x128xf32> -> vector<2x128xf32>
    %67 = arith.addf %64, %66 : vector<2x128xf32>
    %68 = math.tanh %67 : vector<2x128xf32>
    %c8_i32 = arith.constant 8 : i32
    %c0_53 = arith.constant 0 : index
    %c0_54 = arith.constant 0 : index
    %69 = vector.load %arg9[%c0_53, %c0_54] : memref<2x128xf32, #tpu.memory_space<vmem>>, vector<2x128xf32>
    tpu.vector_store %arg9[%c0_53, %c0_54], %68 {strides = array<i32>} : memref<2x128xf32, #tpu.memory_space<vmem>>, vector<2x128xf32>,
    %c0_i32_55 = arith.constant 0 : i32
    %70 = arith.cmpi eq, %arg1, %c0_i32_55 : i32
    %71 = arith.extui %70 : i1 to i32
    %c0_i32_56 = arith.constant 0 : i32
    %72 = arith.cmpi ne, %71, %c0_i32_56 : i32
    scf.if %72 {
      %c0_57 = arith.constant 0 : index
      %c0_58 = arith.constant 0 : index
      %73 = vector.load %arg6[%c0_57, %c0_58] : memref<128x8xf32, #tpu.memory_space<vmem>>, vector<128x8xf32>
      %cst_59 = arith.constant dense<0.000000e+00> : vector<2x8xf32>
      %74 = tpu.matmul %68, %73, %cst_59 {dimension_numbers = #tpu.dot_dimension_numbers<[1], [0], [0], [1], [0, 0, 1, 1], [], []>} : vector<2x128xf32>, vector<128x8xf32>, vector<2x8xf32> -> vector<2x8xf32>
      %c0_60 = arith.constant 0 : index
      %c0_61 = arith.constant 0 : index
      %75 = vector.load %arg7[%c0_60, %c0_61] : memref<1x8xf32, #tpu.memory_space<vmem>>, vector<1x8xf32>
      %76 = vector.broadcast %75 : vector<1x8xf32> to vector<2x8xf32>
      %77 = arith.addf %74, %76 : vector<2x8xf32>
      %c0_62 = arith.constant 0 : index
      %c0_63 = arith.constant 0 : index
      %78 = vector.load %arg8[%c0_62, %c0_63] : memref<2x8xf32, #tpu.memory_space<vmem>>, vector<2x8xf32>
      tpu.vector_store %arg8[%c0_62, %c0_63], %77 {strides = array<i32>} : memref<2x8xf32, #tpu.memory_space<vmem>>, vector<2x8xf32>,
    } else {
    }
    return
  }
  func.func @transform_0(%arg0: i32, %arg1: i32) -> (i32, i32, i32) {
    %c0_i32 = arith.constant 0 : i32
    %c0_i32_0 = arith.constant 0 : i32
    return %arg1, %arg0, %c0_i32 : i32, i32, i32
  }
  func.func @transform_1(%arg0: i32, %arg1: i32) -> (i32, i32) {
    %c0_i32 = arith.constant 0 : i32
    %c0_i32_0 = arith.constant 0 : i32
    %c0_i32_1 = arith.constant 0 : i32
    return %c0_i32, %c0_i32_0 : i32, i32
  }
  func.func @transform_2(%arg0: i32, %arg1: i32) -> (i32, i32) {
    %c0_i32 = arith.constant 0 : i32
    %c0_i32_0 = arith.constant 0 : i32
    %c0_i32_1 = arith.constant 0 : i32
    return %c0_i32, %c0_i32_0 : i32, i32
  }
  func.func @transform_3(%arg0: i32, %arg1: i32) -> (i32, i32) {
    %c0_i32 = arith.constant 0 : i32
    %c0_i32_0 = arith.constant 0 : i32
    %c0_i32_1 = arith.constant 0 : i32
    return %c0_i32, %c0_i32_0 : i32, i32
  }
  func.func @transform_4(%arg0: i32, %arg1: i32) -> (i32, i32) {
    %c0_i32 = arith.constant 0 : i32
    %c0_i32_0 = arith.constant 0 : i32
    %c0_i32_1 = arith.constant 0 : i32
    return %c0_i32, %c0_i32_0 : i32, i32
  }
  func.func @transform_5(%arg0: i32, %arg1: i32) -> (i32, i32) {
    %c0_i32 = arith.constant 0 : i32
    %c0_i32_0 = arith.constant 0 : i32
    %c0_i32_1 = arith.constant 0 : i32
    return %c0_i32, %c0_i32_0 : i32, i32
  }
  func.func @transform_6(%arg0: i32, %arg1: i32) -> (i32, i32) {
    %c0_i32 = arith.constant 0 : i32
    %c0_i32_0 = arith.constant 0 : i32
    return %arg0, %c0_i32 : i32, i32
  }
}

module attributes {stable_mosaic.version = 11 : i64} {
  func.func @rnn_kernel(%arg0: i32, %arg1: i32, %arg2: memref<8x2x16xf32, #tpu.memory_space<vmem>>, %arg3: memref<16x128xf32, #tpu.memory_space<vmem>>, %arg4: memref<1x128xf32, #tpu.memory_space<vmem>>, %arg5: memref<128x128xf32, #tpu.memory_space<vmem>>, %arg6: memref<128x8xf32, #tpu.memory_space<vmem>>, %arg7: memref<1x8xf32, #tpu.memory_space<vmem>>, %arg8: memref<2x8xf32, #tpu.memory_space<vmem>>, %arg9: memref<2x128xf32, #tpu.memory_space<vmem>>, %arg10: memref<8x2x128xf32, #tpu.memory_space<vmem>>) attributes {dimension_semantics = [#tpu.dimension_semantics<parallel>, #tpu.dimension_semantics<arbitrary>], iteration_bounds = array<i64: 1, 1>, scalar_prefetch = 0 : i64, scratch_operands = 2 : i64, tpu.core_type = #tpu.core_type<tc>, window_params = [{transform_indices = @transform_0, window_bounds = array<i64: 8, 2, 16>}, {pipeline_mode = #tpu.pipeline_mode<synchronous>, transform_indices = @transform_1, window_bounds = array<i64: 16, 128>}, {pipeline_mode = #tpu.pipeline_mode<synchronous>, transform_indices = @transform_2, window_bounds = array<i64: 1, 128>}, {pipeline_mode = #tpu.pipeline_mode<synchronous>, transform_indices = @transform_3, window_bounds = array<i64: 128, 128>}, {pipeline_mode = #tpu.pipeline_mode<synchronous>, transform_indices = @transform_4, window_bounds = array<i64: 128, 8>}, {pipeline_mode = #tpu.pipeline_mode<synchronous>, transform_indices = @transform_5, window_bounds = array<i64: 1, 8>}, {transform_indices = @transform_6, window_bounds = array<i64: 2, 8>}]} {
    %c0_i32 = arith.constant 0 : i32
    %0 = arith.cmpi eq, %arg1, %c0_i32 : i32
    %1 = arith.extui %0 : i1 to i32
    %c0_i32_0 = arith.constant 0 : i32
    %2 = arith.cmpi ne, %1, %c0_i32_0 : i32
    scf.if %2 {
      %cst_57 = arith.constant 0.000000e+00 : f32
      %73 = vector.broadcast %cst_57 : f32 to vector<2x128xf32>
      %c0_58 = arith.constant 0 : index
      %c0_59 = arith.constant 0 : index
      %74 = vector.load %arg9[%c0_58, %c0_59] : memref<2x128xf32, #tpu.memory_space<vmem>>, vector<2x128xf32>
      tpu.vector_store %arg9[%c0_58, %c0_59], %73 {strides = array<i32>} : memref<2x128xf32, #tpu.memory_space<vmem>>, vector<2x128xf32>,
    } else {
    }
    %c0 = arith.constant 0 : index
    %c0_1 = arith.constant 0 : index
    %c0_2 = arith.constant 0 : index
    %3 = vector.load %arg2[%c0, %c0_1, %c0_2] : memref<8x2x16xf32, #tpu.memory_space<vmem>>, vector<8x2x16xf32>
    %4 = vector.shape_cast %3 : vector<8x2x16xf32> to vector<16x16xf32>
    %c0_3 = arith.constant 0 : index
    %c0_4 = arith.constant 0 : index
    %5 = vector.load %arg3[%c0_3, %c0_4] : memref<16x128xf32, #tpu.memory_space<vmem>>, vector<16x128xf32>
    %cst = arith.constant dense<0.000000e+00> : vector<16x128xf32>
    %6 = tpu.matmul %4, %5, %cst {dimension_numbers = #tpu.dot_dimension_numbers<[1], [0], [0], [1], [0, 0, 1, 1], [], []>} : vector<16x16xf32>, vector<16x128xf32>, vector<16x128xf32> -> vector<16x128xf32>
    %c0_5 = arith.constant 0 : index
    %c0_6 = arith.constant 0 : index
    %7 = vector.load %arg4[%c0_5, %c0_6] : memref<1x128xf32, #tpu.memory_space<vmem>>, vector<1x128xf32>
    %8 = vector.broadcast %7 : vector<1x128xf32> to vector<16x128xf32>
    %9 = arith.addf %6, %8 : vector<16x128xf32>
    %10 = vector.shape_cast %9 : vector<16x128xf32> to vector<8x2x128xf32>
    %c0_7 = arith.constant 0 : index
    %c0_8 = arith.constant 0 : index
    %c0_9 = arith.constant 0 : index
    %11 = vector.load %arg10[%c0_7, %c0_8, %c0_9] : memref<8x2x128xf32, #tpu.memory_space<vmem>>, vector<8x2x128xf32>
    tpu.vector_store %arg10[%c0_7, %c0_8, %c0_9], %10 {strides = array<i32>} : memref<8x2x128xf32, #tpu.memory_space<vmem>>, vector<8x2x128xf32>,
    %c0_10 = arith.constant 0 : index
    %c0_11 = arith.constant 0 : index
    %12 = vector.load %arg9[%c0_10, %c0_11] : memref<2x128xf32, #tpu.memory_space<vmem>>, vector<2x128xf32>
    %c0_i32_12 = arith.constant 0 : i32
    %13 = arith.index_cast %c0_i32_12 : i32 to index
    %c0_13 = arith.constant 0 : index
    %c0_14 = arith.constant 0 : index
    %14 = vector.load %arg10[%13, %c0_13, %c0_14] : memref<8x2x128xf32, #tpu.memory_space<vmem>>, vector<1x2x128xf32>
    %15 = vector.shape_cast %14 : vector<1x2x128xf32> to vector<2x128xf32>
    %c0_15 = arith.constant 0 : index
    %c0_16 = arith.constant 0 : index
    %16 = vector.load %arg5[%c0_15, %c0_16] : memref<128x128xf32, #tpu.memory_space<vmem>>, vector<128x128xf32>
    %cst_17 = arith.constant dense<0.000000e+00> : vector<2x128xf32>
    %17 = tpu.matmul %12, %16, %cst_17 {dimension_numbers = #tpu.dot_dimension_numbers<[1], [0], [0], [1], [0, 0, 1, 1], [], []>} : vector<2x128xf32>, vector<128x128xf32>, vector<2x128xf32> -> vector<2x128xf32>
    %18 = arith.addf %15, %17 : vector<2x128xf32>
    %19 = math.tanh %18 : vector<2x128xf32>
    %c1_i32 = arith.constant 1 : i32
    %20 = arith.index_cast %c1_i32 : i32 to index
    %c0_18 = arith.constant 0 : index
    %c0_19 = arith.constant 0 : index
    %21 = vector.load %arg10[%20, %c0_18, %c0_19] : memref<8x2x128xf32, #tpu.memory_space<vmem>>, vector<1x2x128xf32>
    %22 = vector.shape_cast %21 : vector<1x2x128xf32> to vector<2x128xf32>
    %c0_20 = arith.constant 0 : index
    %c0_21 = arith.constant 0 : index
    %23 = vector.load %arg5[%c0_20, %c0_21] : memref<128x128xf32, #tpu.memory_space<vmem>>, vector<128x128xf32>
    %cst_22 = arith.constant dense<0.000000e+00> : vector<2x128xf32>
    %24 = tpu.matmul %19, %23, %cst_22 {dimension_numbers = #tpu.dot_dimension_numbers<[1], [0], [0], [1], [0, 0, 1, 1], [], []>} : vector<2x128xf32>, vector<128x128xf32>, vector<2x128xf32> -> vector<2x128xf32>
    %25 = arith.addf %22, %24 : vector<2x128xf32>
    %26 = math.tanh %25 : vector<2x128xf32>
    %c2_i32 = arith.constant 2 : i32
    %27 = arith.index_cast %c2_i32 : i32 to index
    %c0_23 = arith.constant 0 : index
    %c0_24 = arith.constant 0 : index
    %28 = vector.load %arg10[%27, %c0_23, %c0_24] : memref<8x2x128xf32, #tpu.memory_space<vmem>>, vector<1x2x128xf32>
    %29 = vector.shape_cast %28 : vector<1x2x128xf32> to vector<2x128xf32>
    %c0_25 = arith.constant 0 : index
    %c0_26 = arith.constant 0 : index
    %30 = vector.load %arg5[%c0_25, %c0_26] : memref<128x128xf32, #tpu.memory_space<vmem>>, vector<128x128xf32>
    %cst_27 = arith.constant dense<0.000000e+00> : vector<2x128xf32>
    %31 = tpu.matmul %26, %30, %cst_27 {dimension_numbers = #tpu.dot_dimension_numbers<[1], [0], [0], [1], [0, 0, 1, 1], [], []>} : vector<2x128xf32>, vector<128x128xf32>, vector<2x128xf32> -> vector<2x128xf32>
    %32 = arith.addf %29, %31 : vector<2x128xf32>
    %33 = math.tanh %32 : vector<2x128xf32>
    %c3_i32 = arith.constant 3 : i32
    %34 = arith.index_cast %c3_i32 : i32 to index
    %c0_28 = arith.constant 0 : index
    %c0_29 = arith.constant 0 : index
    %35 = vector.load %arg10[%34, %c0_28, %c0_29] : memref<8x2x128xf32, #tpu.memory_space<vmem>>, vector<1x2x128xf32>
    %36 = vector.shape_cast %35 : vector<1x2x128xf32> to vector<2x128xf32>
    %c0_30 = arith.constant 0 : index
    %c0_31 = arith.constant 0 : index
    %37 = vector.load %arg5[%c0_30, %c0_31] : memref<128x128xf32, #tpu.memory_space<vmem>>, vector<128x128xf32>
    %cst_32 = arith.constant dense<0.000000e+00> : vector<2x128xf32>
    %38 = tpu.matmul %33, %37, %cst_32 {dimension_numbers = #tpu.dot_dimension_numbers<[1], [0], [0], [1], [0, 0, 1, 1], [], []>} : vector<2x128xf32>, vector<128x128xf32>, vector<2x128xf32> -> vector<2x128xf32>
    %39 = arith.addf %36, %38 : vector<2x128xf32>
    %40 = math.tanh %39 : vector<2x128xf32>
    %c4_i32 = arith.constant 4 : i32
    %41 = arith.index_cast %c4_i32 : i32 to index
    %c0_33 = arith.constant 0 : index
    %c0_34 = arith.constant 0 : index
    %42 = vector.load %arg10[%41, %c0_33, %c0_34] : memref<8x2x128xf32, #tpu.memory_space<vmem>>, vector<1x2x128xf32>
    %43 = vector.shape_cast %42 : vector<1x2x128xf32> to vector<2x128xf32>
    %c0_35 = arith.constant 0 : index
    %c0_36 = arith.constant 0 : index
    %44 = vector.load %arg5[%c0_35, %c0_36] : memref<128x128xf32, #tpu.memory_space<vmem>>, vector<128x128xf32>
    %cst_37 = arith.constant dense<0.000000e+00> : vector<2x128xf32>
    %45 = tpu.matmul %40, %44, %cst_37 {dimension_numbers = #tpu.dot_dimension_numbers<[1], [0], [0], [1], [0, 0, 1, 1], [], []>} : vector<2x128xf32>, vector<128x128xf32>, vector<2x128xf32> -> vector<2x128xf32>
    %46 = arith.addf %43, %45 : vector<2x128xf32>
    %47 = math.tanh %46 : vector<2x128xf32>
    %c5_i32 = arith.constant 5 : i32
    %48 = arith.index_cast %c5_i32 : i32 to index
    %c0_38 = arith.constant 0 : index
    %c0_39 = arith.constant 0 : index
    %49 = vector.load %arg10[%48, %c0_38, %c0_39] : memref<8x2x128xf32, #tpu.memory_space<vmem>>, vector<1x2x128xf32>
    %50 = vector.shape_cast %49 : vector<1x2x128xf32> to vector<2x128xf32>
    %c0_40 = arith.constant 0 : index
    %c0_41 = arith.constant 0 : index
    %51 = vector.load %arg5[%c0_40, %c0_41] : memref<128x128xf32, #tpu.memory_space<vmem>>, vector<128x128xf32>
    %cst_42 = arith.constant dense<0.000000e+00> : vector<2x128xf32>
    %52 = tpu.matmul %47, %51, %cst_42 {dimension_numbers = #tpu.dot_dimension_numbers<[1], [0], [0], [1], [0, 0, 1, 1], [], []>} : vector<2x128xf32>, vector<128x128xf32>, vector<2x128xf32> -> vector<2x128xf32>
    %53 = arith.addf %50, %52 : vector<2x128xf32>
    %54 = math.tanh %53 : vector<2x128xf32>
    %c6_i32 = arith.constant 6 : i32
    %55 = arith.index_cast %c6_i32 : i32 to index
    %c0_43 = arith.constant 0 : index
    %c0_44 = arith.constant 0 : index
    %56 = vector.load %arg10[%55, %c0_43, %c0_44] : memref<8x2x128xf32, #tpu.memory_space<vmem>>, vector<1x2x128xf32>
    %57 = vector.shape_cast %56 : vector<1x2x128xf32> to vector<2x128xf32>
    %c0_45 = arith.constant 0 : index
    %c0_46 = arith.constant 0 : index
    %58 = vector.load %arg5[%c0_45, %c0_46] : memref<128x128xf32, #tpu.memory_space<vmem>>, vector<128x128xf32>
    %cst_47 = arith.constant dense<0.000000e+00> : vector<2x128xf32>
    %59 = tpu.matmul %54, %58, %cst_47 {dimension_numbers = #tpu.dot_dimension_numbers<[1], [0], [0], [1], [0, 0, 1, 1], [], []>} : vector<2x128xf32>, vector<128x128xf32>, vector<2x128xf32> -> vector<2x128xf32>
    %60 = arith.addf %57, %59 : vector<2x128xf32>
    %61 = math.tanh %60 : vector<2x128xf32>
    %c7_i32 = arith.constant 7 : i32
    %62 = arith.index_cast %c7_i32 : i32 to index
    %c0_48 = arith.constant 0 : index
    %c0_49 = arith.constant 0 : index
    %63 = vector.load %arg10[%62, %c0_48, %c0_49] : memref<8x2x128xf32, #tpu.memory_space<vmem>>, vector<1x2x128xf32>
    %64 = vector.shape_cast %63 : vector<1x2x128xf32> to vector<2x128xf32>
    %c0_50 = arith.constant 0 : index
    %c0_51 = arith.constant 0 : index
    %65 = vector.load %arg5[%c0_50, %c0_51] : memref<128x128xf32, #tpu.memory_space<vmem>>, vector<128x128xf32>
    %cst_52 = arith.constant dense<0.000000e+00> : vector<2x128xf32>
    %66 = tpu.matmul %61, %65, %cst_52 {dimension_numbers = #tpu.dot_dimension_numbers<[1], [0], [0], [1], [0, 0, 1, 1], [], []>} : vector<2x128xf32>, vector<128x128xf32>, vector<2x128xf32> -> vector<2x128xf32>
    %67 = arith.addf %64, %66 : vector<2x128xf32>
    %68 = math.tanh %67 : vector<2x128xf32>
    %c8_i32 = arith.constant 8 : i32
    %c0_53 = arith.constant 0 : index
    %c0_54 = arith.constant 0 : index
    %69 = vector.load %arg9[%c0_53, %c0_54] : memref<2x128xf32, #tpu.memory_space<vmem>>, vector<2x128xf32>
    tpu.vector_store %arg9[%c0_53, %c0_54], %68 {strides = array<i32>} : memref<2x128xf32, #tpu.memory_space<vmem>>, vector<2x128xf32>,
    %c0_i32_55 = arith.constant 0 : i32
    %70 = arith.cmpi eq, %arg1, %c0_i32_55 : i32
    %71 = arith.extui %70 : i1 to i32
    %c0_i32_56 = arith.constant 0 : i32
    %72 = arith.cmpi ne, %71, %c0_i32_56 : i32
    scf.if %72 {
      %c0_57 = arith.constant 0 : index
      %c0_58 = arith.constant 0 : index
      %73 = vector.load %arg6[%c0_57, %c0_58] : memref<128x8xf32, #tpu.memory_space<vmem>>, vector<128x8xf32>
      %cst_59 = arith.constant dense<0.000000e+00> : vector<2x8xf32>
      %74 = tpu.matmul %68, %73, %cst_59 {dimension_numbers = #tpu.dot_dimension_numbers<[1], [0], [0], [1], [0, 0, 1, 1], [], []>} : vector<2x128xf32>, vector<128x8xf32>, vector<2x8xf32> -> vector<2x8xf32>
      %c0_60 = arith.constant 0 : index
      %c0_61 = arith.constant 0 : index
      %75 = vector.load %arg7[%c0_60, %c0_61] : memref<1x8xf32, #tpu.memory_space<vmem>>, vector<1x8xf32>
      %76 = vector.broadcast %75 : vector<1x8xf32> to vector<2x8xf32>
      %77 = arith.addf %74, %76 : vector<2x8xf32>
      %c0_62 = arith.constant 0 : index
      %c0_63 = arith.constant 0 : index
      %78 = vector.load %arg8[%c0_62, %c0_63] : memref<2x8xf32, #tpu.memory_space<vmem>>, vector<2x8xf32>
      tpu.vector_store %arg8[%c0_62, %c0_63], %77 {strides = array<i32>} : memref<2x8xf32, #tpu.memory_space<vmem>>, vector<2x8xf32>,
    } else {
    }
    return
  }
  func.func @transform_0(%arg0: i32, %arg1: i32) -> (i32, i32, i32) {
    %c0_i32 = arith.constant 0 : i32
    %c0_i32_0 = arith.constant 0 : i32
    return %arg1, %arg0, %c0_i32 : i32, i32, i32
  }
  func.func @transform_1(%arg0: i32, %arg1: i32) -> (i32, i32) {
    %c0_i32 = arith.constant 0 : i32
    %c0_i32_0 = arith.constant 0 : i32
    %c0_i32_1 = arith.constant 0 : i32
    return %c0_i32, %c0_i32_0 : i32, i32
  }
  func.func @transform_2(%arg0: i32, %arg1: i32) -> (i32, i32) {
    %c0_i32 = arith.constant 0 : i32
    %c0_i32_0 = arith.constant 0 : i32
    %c0_i32_1 = arith.constant 0 : i32
    return %c0_i32, %c0_i32_0 : i32, i32
  }
  func.func @transform_3(%arg0: i32, %arg1: i32) -> (i32, i32) {
    %c0_i32 = arith.constant 0 : i32
    %c0_i32_0 = arith.constant 0 : i32
    %c0_i32_1 = arith.constant 0 : i32
    return %c0_i32, %c0_i32_0 : i32, i32
  }
  func.func @transform_4(%arg0: i32, %arg1: i32) -> (i32, i32) {
    %c0_i32 = arith.constant 0 : i32
    %c0_i32_0 = arith.constant 0 : i32
    %c0_i32_1 = arith.constant 0 : i32
    return %c0_i32, %c0_i32_0 : i32, i32
  }
  func.func @transform_5(%arg0: i32, %arg1: i32) -> (i32, i32) {
    %c0_i32 = arith.constant 0 : i32
    %c0_i32_0 = arith.constant 0 : i32
    %c0_i32_1 = arith.constant 0 : i32
    return %c0_i32, %c0_i32_0 : i32, i32
  }
  func.func @transform_6(%arg0: i32, %arg1: i32) -> (i32, i32) {
    %c0_i32 = arith.constant 0 : i32
    %c0_i32_0 = arith.constant 0 : i32
    return %arg0, %c0_i32 : i32, i32
  }
}

</mosaic_0001>

<bundles_post_ra>
// kernel: tpu_custom_call.1
= control target key start
LH: loop header
LB: loop body
LE: loop exit
PB: predicated region body
PF: predicated region fallthrough
CT: control target
= control target key end

     0   :  { %11 = vsyncpa [#allocation5], 0  ;;  %s2039_s0 = inlined_call_operand.hbm [shape: f32[8,2,16], index: 0, kind: input, shape index: {}]   ;;  %s2040_s1 = inlined_call_operand.hbm [shape: f32[16,128], index: 1, kind: input, shape index: {}]   ;;  %s2041_s2 = inlined_call_operand.vmem [shape: f32[1,128], index: 2, kind: input, shape index: {}]   ;;  %s2042_s3 = inlined_call_operand.vmem [shape: f32[128,128], index: 3, kind: input, shape index: {}]   ;;  %s2043_s4 = inlined_call_operand.vmem [shape: f32[128,8], index: 4, kind: input, shape index: {}]   ;;  %s2044_s5 = inlined_call_operand.vmem [shape: f32[1,8], index: 5, kind: input, shape index: {}]   ;;  %s2045_s6 = inlined_call_operand.hbm [shape: f32[2,8], index: 6, kind: output, shape index: {}]  }
   0x1   :  { %12 = vsyncpa [#allocation8], 0 }
   0x2   :  { %13 = vsyncpa [#allocation6], 0  ;;  %s1550_s21 = smov [#allocation4]  }
   0x3   :  { %s19_s22 = sshll.u32 %s1550_s21, 4  ;;  %s20_s22 = int_to_ptr.vmem [resolvable:$true] %s19_s22 }
   0x4   :  { %s1492_s23 = scalar_lea.vmem %s20_s22, 256  ;;  %p1497_p1 = scmp.lt.s32.totalorder %s20_s22, %s20_s22 }
   0x5   :  { %p1493_p0 = scmp.ne.s32.totalorder %s20_s22, %s1492_s23  ;;  %p1498_p2 = scmp.lt.s32.totalorder %s1492_s23, %s1492_s23 }
   0x7   :  { %p1499_p3 = por %p1498_p2, %p1497_p1 }
   0x9   :  { %p1500_p4 = pnand %p1499_p3, %p1493_p0 }
   0xb   :  { %1503 = shalt.err (!%p1500_p4)
}
   0xc   :  { %s1551_s24 = smov 32   ;;  %s1552_s25 = smov 2  }
   0xd   :  { %25 = dma.hbm_to_vmem [thread:$0]  %s2039_s0, 256, %s20_s22, [#allocation5], %s1551_s24, %s1551_s24, %s1552_s25  }
   0xe   :  { %s1553_s28 = smov [#allocation7]  }
   0xf   :  { %s31_s29 = sshll.u32 %s1553_s28, 4  ;;  %s32_s29 = int_to_ptr.vmem [resolvable:$true] %s31_s29 }
  0x10   :  { %s1512_s30 = scalar_lea.vmem %s32_s29, 256  ;;  %p1517_p6 = scmp.lt.s32.totalorder %s32_s29, %s32_s29 }
  0x11   :  { %p1513_p5 = scmp.ne.s32.totalorder %s32_s29, %s1512_s30  ;;  %p1518_p7 = scmp.lt.s32.totalorder %s1512_s30, %s1512_s30 }
  0x13   :  { %p1519_p8 = por %p1518_p7, %p1517_p6 }
  0x15   :  { %p1520_p9 = pnand %p1519_p8, %p1513_p5 }
  0x17   :  { %1523 = shalt.err (!%p1520_p9)
}
  0x18   :  { %s1554_s7 = smov 128   ;;  %s1555_s8 = smov 8  }
  0x19   :  { %37 = dma.hbm_to_vmem [thread:$0]  %s2040_s1, 256, %s32_s29, [#allocation8], %s1554_s7, %s1554_s7, %s1555_s8  }
  0x1a   :  { %1544 = dma.done.wait [#allocation5], 256  }
  0x1b   :  { %1545 = vsyncadd [#allocation5], 4294967040 }
  0x1c   :  { %1546 = dma.done.wait [#allocation8], 256  }
  0x1d   :  { %1547 = vsyncadd [#allocation8], 4294967040  ;;  %v1556_v0 = vmov 0.0   ;;  %v1557_v1 = vmov 1983009808   ;;  %v87_v3 = vlaneseq  ;;  %vm1558_vm0 = vmmov 0  }
  0x1e   :  { %1143 = vmatprep.subr.mxu1 %v1556_v0  ;;  %56 = vst [vmem:[#allocation2] sm:$0x3] %v1556_v0  ;;  %v85_v2 = vunpack.c.l.s4 %v1557_v1  ;;  %1175 = vmatprep.mubr.msk.f32.mxu1 %vm1558_vm0, %v1556_v0  ;;  %v1608_v6 = vld [vmem:[%s2042_s3 + $0x78] sm:$0xff]  ;;  %v1613_v7 = vld [vmem:[%s2042_s3 + $0x70] sm:$0xff]  ;;  %v1620_v8 = vld [vmem:[%s2042_s3 + $0x68] sm:$0xff]  ;;  %vm116_vm1 = vcmask 130048  }
  0x1f   :  { %v88_v5 = vshrl.u32 %v87_v3, 7  ;;  %1144 = vmatpush3.msra.mxu1 %v1608_v6  ;;  %v66_v9 = vld [vmem:[#allocation7 + $0x8] sm:$0xff]  ;;  %v65_v11 = vld [vmem:[#allocation7] sm:$0xff]  ;;  %v57_v12 = vld [vmem:[#allocation4] sm:$0x3]  ;;  %s1559_s21 = smov [#allocation9]  }
  0x20   :  { %v86_v4 = vunpack.c.0.s8 %v85_v2  ;;  %1145 = vmatprep.subr.mxu1 %v1556_v0  ;;  %1136 = vmatprep.subr.mxu0 %v66_v9  ;;  %v58_v13 = vld [vmem:[#allocation4 + $0x2] sm:$0x3]  ;;  %v1629_v14 = vld [vmem:[%s2042_s3 + $0x60] sm:$0xff]  ;;  %v59_v15 = vld [vmem:[#allocation4 + $0x4] sm:$0x3]  ;;  %s961_s22 = sshll.u32 %s1559_s21, 4  ;;  %s962_s22 = int_to_ptr.vmem [resolvable:$true] %s961_s22 }
  0x21   :  { %1146 = vmatpush3.msra.mxu1 %v1613_v7  ;;  %1137 = vmatpush3.msra.mxu0 %v66_v9  ;;  %v60_v16 = vld [vmem:[#allocation4 + $0x6] sm:$0x3]  ;;  %v82_v17 = vcombine.low %v57_v12, %v58_v13  ;;  %v61_v19 = vld [vmem:[#allocation4 + $0x8] sm:$0x3]  ;;  %v62_v20 = vld [vmem:[#allocation4 + $0xa] sm:$0x3]  ;;  %p1529_p11 = scmp.lt.s32.totalorder %s962_s22, %s962_s22 }
  0x22   :  { %v1622_v10 = vsub.s32 %v86_v4, %v88_v5  ;;  %1147 = vmatprep.subr.mxu1 %v1556_v0  ;;  %1138 = vmatprep.subr.mxu0 %v65_v11  ;;  %v83_v18 = vcombine.low %v59_v15, %v60_v16  ;;  %v63_v21 = vld [vmem:[#allocation4 + $0xc] sm:$0x3]  ;;  %v64_v24 = vld [vmem:[#allocation4 + $0xe] sm:$0x3]  ;;  %v99_v25 = vcombine.low %v61_v19, %v62_v20  ;;  %v1646_v28 = vld [vmem:[%s2042_s3 + $0x50] sm:$0xff]  ;;  %vm953_vm2 = vcmask 58368  }
  0x23   :  { %1148 = vmatpush3.msra.mxu1 %v1620_v8  ;;  %v1636_v22 = vld [vmem:[%s2042_s3 + $0x58] sm:$0xff]  ;;  %1139 = vmatpush3.msra.mxu0 %v65_v11  ;;  %v100_v27 = vcombine.low %v63_v21, %v64_v24  ;;  %v1655_v32 = vld [vmem:[%s2042_s3 + $0x48] sm:$0xff]  ;;  %v1662_v34 = vld [vmem:[%s2042_s3 + $0x40] sm:$0xff] }
  0x24   :  { %1149 = vmatprep.subr.mxu1 %v1556_v0  ;;  %v90_v23 = vrot.slane %v82_v17, %v1622_v10  ;;  %v97_v26 = vrot.slane %v83_v18, %v1622_v10  ;;  %1178 = vmatprep.subr.mxu0 %v1556_v0  ;;  %v107_v29 = vrot.slane %v99_v25, %v1622_v10  ;;  %v1669_v35 = vld [vmem:[%s2042_s3 + $0x38] sm:$0xff]  ;;  %v1678_v36 = vld [vmem:[%s2042_s3 + $0x30] sm:$0xff]  ;;  %v1687_v37 = vld [vmem:[%s2042_s3 + $0x28] sm:$0xff] }
  0x25   :  { %1150 = vmatpush3.msra.mxu1 %v1629_v14  ;;  %v114_v31 = vrot.slane %v100_v27, %v1622_v10  ;;  %v1696_v38 = vld [vmem:[%s2042_s3 + $0x20] sm:$0xff]  ;;  %v1705_v39 = vld [vmem:[%s2042_s3 + $0x18] sm:$0xff]  ;;  %v1714_v40 = vld [vmem:[%s2042_s3 + $0x10] sm:$0xff] }
  0x26   :  { %1151 = vmatprep.subr.mxu1 %v1556_v0  ;;  %v98_v30 = vcombine.low %v90_v23, %v97_v26  ;;  %v1723_v41 = vld [vmem:[%s2042_s3 + $0x8] sm:$0xff]  ;;  %v1732_v42 = vld [vmem:[%s2042_s3] sm:$0xff]  ;;  %v875_v26 = vld [vmem:[%s2043_s4 + $0x78] sm:$0xff] }
  0x27   :  { %1152 = vmatpush3.msra.mxu1 %v1636_v22  ;;  %v115_v33 = vcombine.low %v107_v29, %v114_v31  ;;  %v248_v43 = vld [vmem:[#allocation2] sm:$0x3]  ;;  %v874_v27 = vld [vmem:[%s2043_s4 + $0x70] sm:$0xff] }
  0x28   :  { %1153 = vmatprep.subr.mxu1 %v1556_v0  ;;  %1140 = vmatprep.mubr.msk.f32.mxu0 %vm116_vm1, %v98_v30  ;;  %v971_v44 = vld [vmem:[%s2041_s2] ss:$0 sm:$0xff]  ;;  %v871_v30 = vld [vmem:[%s2043_s4 + $0x58] sm:$0xff]  ;;  %v870_v31 = vld [vmem:[%s2043_s4 + $0x50] sm:$0xff] }
  0x29   :  { %1154 = vmatpush3.msra.mxu1 %v1646_v28  ;;  %1141 = vmatmul.mubr.msk.f32.vlgmr.msra.gmra.mxu0 %vm116_vm1, %v115_v33  ;;  %v872_v29 = vld [vmem:[%s2043_s4 + $0x60] sm:$0xff] }
  0x2a   :  { %1155 = vmatprep.subr.mxu1 %v1556_v0  ;;  %1179 = vmatpush3.msra.mxu0 %v1608_v6 }
  0x2b   :  { %1156 = vmatpush3.msra.mxu1 %v1655_v32  ;;  %1180 = vmatprep.subr.mxu0 %v1556_v0 }
  0x2c   :  { %1157 = vmatprep.subr.mxu1 %v1556_v0  ;;  %1181 = vmatpush3.msra.mxu0 %v1613_v7 }
  0x2d   :  { %1158 = vmatpush3.msra.mxu1 %v1662_v34  ;;  %1182 = vmatprep.subr.mxu0 %v1556_v0 }
  0x2e   :  { %1159 = vmatprep.subr.mxu1 %v1556_v0  ;;  %1183 = vmatpush3.msra.mxu0 %v1620_v8 }
  0x2f   :  { %1160 = vmatpush3.msra.mxu1 %v1669_v35  ;;  %1184 = vmatprep.subr.mxu0 %v1556_v0 }
  0x30   :  { %1161 = vmatprep.subr.mxu1 %v1556_v0  ;;  %1185 = vmatpush3.msra.mxu0 %v1629_v14 }
  0x31   :  { %1162 = vmatpush3.msra.mxu1 %v1678_v36  ;;  %1186 = vmatprep.subr.mxu0 %v1556_v0 }
  0x32   :  { %1163 = vmatprep.subr.mxu1 %v1556_v0  ;;  %1187 = vmatpush3.msra.mxu0 %v1636_v22 }
  0x33   :  { %1164 = vmatpush3.msra.mxu1 %v1687_v37  ;;  %1188 = vmatprep.subr.mxu0 %v1556_v0 }
  0x34   :  { %1165 = vmatprep.subr.mxu1 %v1556_v0  ;;  %1189 = vmatpush3.msra.mxu0 %v1646_v28 }
  0x35   :  { %1166 = vmatpush3.msra.mxu1 %v1696_v38  ;;  %1190 = vmatprep.subr.mxu0 %v1556_v0 }
  0x36   :  { %1167 = vmatprep.subr.mxu1 %v1556_v0  ;;  %1191 = vmatpush3.msra.mxu0 %v1655_v32 }
  0x37   :  { %1168 = vmatpush3.msra.mxu1 %v1705_v39  ;;  %1192 = vmatprep.subr.mxu0 %v1556_v0 }
  0x38   :  { %1169 = vmatprep.subr.mxu1 %v1556_v0  ;;  %1193 = vmatpush3.msra.mxu0 %v1662_v34 }
  0x39   :  { %1170 = vmatpush3.msra.mxu1 %v1714_v40  ;;  %1194 = vmatprep.subr.mxu0 %v1556_v0 }
  0x3a   :  { %1171 = vmatprep.subr.mxu1 %v1556_v0  ;;  %1195 = vmatpush3.msra.mxu0 %v1669_v35 }
  0x3b   :  { %1172 = vmatpush3.msra.mxu1 %v1723_v41  ;;  %1196 = vmatprep.subr.mxu0 %v1556_v0 }
  0x3c   :  { %1173 = vmatprep.subr.mxu1 %v1556_v0  ;;  %1197 = vmatpush3.msra.mxu0 %v1678_v36 }
  0x3d   :  { %1174 = vmatpush3.msra.mxu1 %v1732_v42  ;;  %1198 = vmatprep.subr.mxu0 %v1556_v0 }
  0x3e   :  { %1176 = vmatmul.mubr.f32.vlgmr.msra.gmra.mxu1 %v248_v43  ;;  %1210 = vmatprep.mubr.msk.f32.mxu0 %vm1558_vm0, %v1556_v0  ;;  %v863_v43 = vld [vmem:[%s2043_s4 + $0x18] sm:$0xff] }
  0x3f   :  { %1199 = vmatpush3.msra.mxu0 %v1687_v37  ;;  %1213 = vmatprep.subr.mxu1 %v1556_v0 }
  0x40   :  { %1200 = vmatprep.subr.mxu0 %v1556_v0  ;;  %1214 = vmatpush3.msra.mxu1 %v1608_v6 }
  0x41   :  { %1201 = vmatpush3.msra.mxu0 %v1696_v38  ;;  %1215 = vmatprep.subr.mxu1 %v1556_v0 }
  0x42   :  { %1202 = vmatprep.subr.mxu0 %v1556_v0  ;;  %1216 = vmatpush3.msra.mxu1 %v1613_v7 }
  0x43   :  { %1203 = vmatpush3.msra.mxu0 %v1705_v39  ;;  %1217 = vmatprep.subr.mxu1 %v1556_v0 }
  0x44   :  { %1204 = vmatprep.subr.mxu0 %v1556_v0  ;;  %1218 = vmatpush3.msra.mxu1 %v1620_v8 }
  0x45   :  { %1205 = vmatpush3.msra.mxu0 %v1714_v40  ;;  %1219 = vmatprep.subr.mxu1 %v1556_v0 }
  0x46   :  { %1206 = vmatprep.subr.mxu0 %v1556_v0  ;;  %1220 = vmatpush3.msra.mxu1 %v1629_v14 }
  0x47   :  { %1207 = vmatpush3.msra.mxu0 %v1723_v41  ;;  %1221 = vmatprep.subr.mxu1 %v1556_v0 }
  0x48   :  { %1208 = vmatprep.subr.mxu0 %v1556_v0  ;;  %1222 = vmatpush3.msra.mxu1 %v1636_v22 }
  0x49   :  { %1209 = vmatpush3.msra.mxu0 %v1732_v42  ;;  %1223 = vmatprep.subr.mxu1 %v1556_v0 }
  0x4a   :  { %1224 = vmatpush3.msra.mxu1 %v1646_v28  ;;  %1245 = vmatprep.mubr.msk.f32.mxu1 %vm1558_vm0, %v1556_v0 }
  0x4b   :  { %1225 = vmatprep.subr.mxu1 %v1556_v0  ;;  %1248 = vmatprep.subr.mxu0 %v1556_v0 }
  0x4c   :  { %1226 = vmatpush3.msra.mxu1 %v1655_v32 }
  0x4d   :  { %1227 = vmatprep.subr.mxu1 %v1556_v0 }
  0x4e   :  { %1228 = vmatpush3.msra.mxu1 %v1662_v34 }
  0x4f   :  { %1229 = vmatprep.subr.mxu1 %v1556_v0 }
  0x50   :  { %1230 = vmatpush3.msra.mxu1 %v1669_v35 }
  0x51   :  { %1231 = vmatprep.subr.mxu1 %v1556_v0 }
  0x52   :  { %1232 = vmatpush3.msra.mxu1 %v1678_v36 }
  0x53   :  { %1233 = vmatprep.subr.mxu1 %v1556_v0 }
  0x54   :  { %1234 = vmatpush3.msra.mxu1 %v1687_v37 }
  0x55   :  { %1235 = vmatprep.subr.mxu1 %v1556_v0 }
  0x56   :  { %1236 = vmatpush3.msra.mxu1 %v1696_v38 }
  0x57   :  { %1237 = vmatprep.subr.mxu1 %v1556_v0 }
  0x58   :  { %1238 = vmatpush3.msra.mxu1 %v1705_v39 }
  0x59   :  { %1239 = vmatprep.subr.mxu1 %v1556_v0 }
  0x5a   :  { %1240 = vmatpush3.msra.mxu1 %v1714_v40 }
  0x5b   :  { %1241 = vmatprep.subr.mxu1 %v1556_v0 }
  0x5c   :  { %1242 = vmatpush3.msra.mxu1 %v1723_v41 }
  0x5d   :  { %1243 = vmatprep.subr.mxu1 %v1556_v0 }
  0x5e   :  { %1244 = vmatpush3.msra.mxu1 %v1732_v42 }
  0x5f   :  { %1283 = vmatprep.subr.mxu1 %v1556_v0 }
  0xe9   :  { %v1142_v45 = vpop.f32.mrf.mxu0 }
  0xea   :  { %v193_v46 = vadd.f32 %v1142_v45, %v971_v44  ;;  %v861_v45 = vld [vmem:[%s2043_s4 + $0x8] sm:$0xff] }
  0xeb   :  { %v187_v47 = vpop.f32.mrf.mxu0 }
  0xec   :  { %v215_v48 = vcombine.high %v193_v46, %v193_v46  ;;  %v222_v49 = vrot.slane %v193_v46, %v1622_v10  ;;  %976 = vst.sshfl [vmem:[#allocation3 + $0x8] sm:$0x3 pattern:$0x76325410] %v193_v46  ;;  %v188_v50 = vadd.f32 %v971_v44, %v187_v47  ;;  %v862_v44 = vld [vmem:[%s2043_s4 + $0x10] sm:$0xff]  ;;  %v860_v46 = vld [vmem:[%s2043_s4] sm:$0xff] }
  0xee   :  { %v229_v51 = vrot.slane %v215_v48, %v1622_v10  ;;  %v230_v52 = vcombine.high %v222_v49, %v222_v49  ;;  %977 = vst.sshfl [vmem:[#allocation3 + $0xc] sm:$0x3 pattern:$0x76325410] %v215_v48  ;;  %v198_v53 = vcombine.high %v188_v50, %v188_v50  ;;  %v205_v54 = vrot.slane %v188_v50, %v1622_v10 }
  0xef   :  { %974 = vst.sshfl [vmem:[#allocation3] sm:$0x3 pattern:$0x76325410] %v188_v50 }
  0xf0   :  { %v231_v55 = vcombine.high %v229_v51, %v229_v51  ;;  %245 = vst [vmem:[#allocation3 + $0xa] sm:$0x3] %v230_v52  ;;  %v212_v56 = vrot.slane %v198_v53, %v1622_v10  ;;  %v213_v57 = vcombine.high %v205_v54, %v205_v54  ;;  %975 = vst.sshfl [vmem:[#allocation3 + $0x4] sm:$0x3 pattern:$0x76325410] %v198_v53 }
  0xf1   :  { %v978_v52 = vld [vmem:[%s2044_s5] ss:$0 sm:$0xff] }
  0xf2   :  { %247 = vst [vmem:[#allocation3 + $0xe] sm:$0x3] %v231_v55  ;;  %v214_v58 = vcombine.high %v212_v56, %v212_v56  ;;  %241 = vst [vmem:[#allocation3 + $0x2] sm:$0x3] %v213_v57 }
  0xf3   :  { %v561_v20 = vld [vmem:[#allocation3 + $0x8] sm:$0x3] }
  0xf4   :  { %243 = vst [vmem:[#allocation3 + $0x6] sm:$0x3] %v214_v58 }
  0xf5   :  { %v709_v33 = vld [vmem:[#allocation3 + $0xc] sm:$0x3] }
  0xf6   :  { %v249_v59 = vld [vmem:[#allocation3] sm:$0x3] }
  0xf7   :  { %v413_v9 = vld [vmem:[#allocation3 + $0x4] sm:$0x3] }
  0xf9   :  { %v339_v1 = vld [vmem:[#allocation3 + $0x2] sm:$0x3]  ;;  %v783_v47 = vld [vmem:[#allocation3 + $0xe] sm:$0x3] }
  0xfb   :  { %v487_v15 = vld [vmem:[#allocation3 + $0x6] sm:$0x3] }
  0xfe   :  { %v332_v60 = vpop.f32.mrf.mxu1 }
  0xff   :  { %v336_v61 = vadd.f32 %v332_v60, %v249_v59 }
 0x100   :  { %v1177_v62 = vpop.f32.mrf.mxu1 }
 0x101   :  { %1468 = vtanh.f32 %v336_v61 }
 0x10e   :  { %v1469_v63 = vpop.eup %1468 }
 0x10f   :  { %1211 = vmatmul.mubr.f32.vlgmr.msra.gmra.mxu0 %v1469_v63 }
 0x110   :  { %1249 = vmatpush3.msra.mxu0 %v1608_v6  ;;  %1280 = vmatprep.mubr.msk.f32.mxu0 %vm1558_vm0, %v1556_v0 }
 0x111   :  { %1250 = vmatprep.subr.mxu0 %v1556_v0 }
 0x112   :  { %1251 = vmatpush3.msra.mxu0 %v1613_v7 }
 0x113   :  { %1252 = vmatprep.subr.mxu0 %v1556_v0 }
 0x114   :  { %1253 = vmatpush3.msra.mxu0 %v1620_v8 }
 0x115   :  { %1254 = vmatprep.subr.mxu0 %v1556_v0 }
 0x116   :  { %1255 = vmatpush3.msra.mxu0 %v1629_v14 }
 0x117   :  { %1256 = vmatprep.subr.mxu0 %v1556_v0 }
 0x118   :  { %1257 = vmatpush3.msra.mxu0 %v1636_v22 }
 0x119   :  { %1258 = vmatprep.subr.mxu0 %v1556_v0 }
 0x11a   :  { %1259 = vmatpush3.msra.mxu0 %v1646_v28 }
 0x11b   :  { %1260 = vmatprep.subr.mxu0 %v1556_v0 }
 0x11c   :  { %1261 = vmatpush3.msra.mxu0 %v1655_v32 }
 0x11d   :  { %1262 = vmatprep.subr.mxu0 %v1556_v0 }
 0x11e   :  { %1263 = vmatpush3.msra.mxu0 %v1662_v34 }
 0x11f   :  { %1264 = vmatprep.subr.mxu0 %v1556_v0 }
 0x120   :  { %1265 = vmatpush3.msra.mxu0 %v1669_v35 }
 0x121   :  { %1266 = vmatprep.subr.mxu0 %v1556_v0 }
 0x122   :  { %1267 = vmatpush3.msra.mxu0 %v1678_v36 }
 0x123   :  { %1268 = vmatprep.subr.mxu0 %v1556_v0 }
 0x124   :  { %1269 = vmatpush3.msra.mxu0 %v1687_v37 }
 0x125   :  { %1270 = vmatprep.subr.mxu0 %v1556_v0 }
 0x126   :  { %1271 = vmatpush3.msra.mxu0 %v1696_v38 }
 0x127   :  { %1272 = vmatprep.subr.mxu0 %v1556_v0 }
 0x128   :  { %1273 = vmatpush3.msra.mxu0 %v1705_v39 }
 0x129   :  { %1274 = vmatprep.subr.mxu0 %v1556_v0 }
 0x12a   :  { %1275 = vmatpush3.msra.mxu0 %v1714_v40 }
 0x12b   :  { %1276 = vmatprep.subr.mxu0 %v1556_v0 }
 0x12c   :  { %1277 = vmatpush3.msra.mxu0 %v1723_v41 }
 0x12d   :  { %1278 = vmatprep.subr.mxu0 %v1556_v0 }
 0x12e   :  { %1279 = vmatpush3.msra.mxu0 %v1732_v42 }
 0x12f   :  { %1318 = vmatprep.subr.mxu0 %v1556_v0 }
 0x1cf   :  { %v406_v2 = vpop.f32.mrf.mxu0 }
 0x1d0   :  { %v410_v3 = vadd.f32 %v406_v2, %v339_v1 }
 0x1d1   :  { %v1212_v4 = vpop.f32.mrf.mxu0 }
 0x1d2   :  { %1470 = vtanh.f32 %v410_v3 }
 0x1df   :  { %v1471_v5 = vpop.eup %1470 }
 0x1e0   :  { %1246 = vmatmul.mubr.f32.vlgmr.msra.gmra.mxu1 %v1471_v5 }
 0x1e1   :  { %1284 = vmatpush3.msra.mxu1 %v1608_v6  ;;  %1315 = vmatprep.mubr.msk.f32.mxu1 %vm1558_vm0, %v1556_v0 }
 0x1e2   :  { %1285 = vmatprep.subr.mxu1 %v1556_v0 }
 0x1e3   :  { %1286 = vmatpush3.msra.mxu1 %v1613_v7 }
 0x1e4   :  { %1287 = vmatprep.subr.mxu1 %v1556_v0 }
 0x1e5   :  { %1288 = vmatpush3.msra.mxu1 %v1620_v8 }
 0x1e6   :  { %1289 = vmatprep.subr.mxu1 %v1556_v0 }
 0x1e7   :  { %1290 = vmatpush3.msra.mxu1 %v1629_v14 }
 0x1e8   :  { %1291 = vmatprep.subr.mxu1 %v1556_v0 }
 0x1e9   :  { %1292 = vmatpush3.msra.mxu1 %v1636_v22 }
 0x1ea   :  { %1293 = vmatprep.subr.mxu1 %v1556_v0 }
 0x1eb   :  { %1294 = vmatpush3.msra.mxu1 %v1646_v28 }
 0x1ec   :  { %1295 = vmatprep.subr.mxu1 %v1556_v0 }
 0x1ed   :  { %1296 = vmatpush3.msra.mxu1 %v1655_v32 }
 0x1ee   :  { %1297 = vmatprep.subr.mxu1 %v1556_v0 }
 0x1ef   :  { %1298 = vmatpush3.msra.mxu1 %v1662_v34 }
 0x1f0   :  { %1299 = vmatprep.subr.mxu1 %v1556_v0 }
 0x1f1   :  { %1300 = vmatpush3.msra.mxu1 %v1669_v35 }
 0x1f2   :  { %1301 = vmatprep.subr.mxu1 %v1556_v0 }
 0x1f3   :  { %1302 = vmatpush3.msra.mxu1 %v1678_v36 }
 0x1f4   :  { %1303 = vmatprep.subr.mxu1 %v1556_v0 }
 0x1f5   :  { %1304 = vmatpush3.msra.mxu1 %v1687_v37 }
 0x1f6   :  { %1305 = vmatprep.subr.mxu1 %v1556_v0 }
 0x1f7   :  { %1306 = vmatpush3.msra.mxu1 %v1696_v38 }
 0x1f8   :  { %1307 = vmatprep.subr.mxu1 %v1556_v0 }
 0x1f9   :  { %1308 = vmatpush3.msra.mxu1 %v1705_v39 }
 0x1fa   :  { %1309 = vmatprep.subr.mxu1 %v1556_v0 }
 0x1fb   :  { %1310 = vmatpush3.msra.mxu1 %v1714_v40 }
 0x1fc   :  { %1311 = vmatprep.subr.mxu1 %v1556_v0 }
 0x1fd   :  { %1312 = vmatpush3.msra.mxu1 %v1723_v41 }
 0x1fe   :  { %1313 = vmatprep.subr.mxu1 %v1556_v0 }
 0x1ff   :  { %1314 = vmatpush3.msra.mxu1 %v1732_v42 }
 0x200   :  { %1353 = vmatprep.subr.mxu1 %v1556_v0 }
 0x2a0   :  { %v480_v10 = vpop.f32.mrf.mxu1 }
 0x2a1   :  { %v484_v11 = vadd.f32 %v480_v10, %v413_v9 }
 0x2a2   :  { %v1247_v12 = vpop.f32.mrf.mxu1 }
 0x2a3   :  { %1472 = vtanh.f32 %v484_v11 }
 0x2b0   :  { %v1473_v13 = vpop.eup %1472 }
 0x2b1   :  { %1281 = vmatmul.mubr.f32.vlgmr.msra.gmra.mxu0 %v1473_v13 }
 0x2b2   :  { %1319 = vmatpush3.msra.mxu0 %v1608_v6  ;;  %1350 = vmatprep.mubr.msk.f32.mxu0 %vm1558_vm0, %v1556_v0 }
 0x2b3   :  { %1320 = vmatprep.subr.mxu0 %v1556_v0 }
 0x2b4   :  { %1321 = vmatpush3.msra.mxu0 %v1613_v7 }
 0x2b5   :  { %1322 = vmatprep.subr.mxu0 %v1556_v0 }
 0x2b6   :  { %1323 = vmatpush3.msra.mxu0 %v1620_v8 }
 0x2b7   :  { %1324 = vmatprep.subr.mxu0 %v1556_v0 }
 0x2b8   :  { %1325 = vmatpush3.msra.mxu0 %v1629_v14 }
 0x2b9   :  { %1326 = vmatprep.subr.mxu0 %v1556_v0 }
 0x2ba   :  { %1327 = vmatpush3.msra.mxu0 %v1636_v22 }
 0x2bb   :  { %1328 = vmatprep.subr.mxu0 %v1556_v0 }
 0x2bc   :  { %1329 = vmatpush3.msra.mxu0 %v1646_v28 }
 0x2bd   :  { %1330 = vmatprep.subr.mxu0 %v1556_v0 }
 0x2be   :  { %1331 = vmatpush3.msra.mxu0 %v1655_v32 }
 0x2bf   :  { %1332 = vmatprep.subr.mxu0 %v1556_v0 }
 0x2c0   :  { %1333 = vmatpush3.msra.mxu0 %v1662_v34 }
 0x2c1   :  { %1334 = vmatprep.subr.mxu0 %v1556_v0 }
 0x2c2   :  { %1335 = vmatpush3.msra.mxu0 %v1669_v35 }
 0x2c3   :  { %1336 = vmatprep.subr.mxu0 %v1556_v0 }
 0x2c4   :  { %1337 = vmatpush3.msra.mxu0 %v1678_v36 }
 0x2c5   :  { %1338 = vmatprep.subr.mxu0 %v1556_v0 }
 0x2c6   :  { %1339 = vmatpush3.msra.mxu0 %v1687_v37 }
 0x2c7   :  { %1340 = vmatprep.subr.mxu0 %v1556_v0 }
 0x2c8   :  { %1341 = vmatpush3.msra.mxu0 %v1696_v38 }
 0x2c9   :  { %1342 = vmatprep.subr.mxu0 %v1556_v0 }
 0x2ca   :  { %1343 = vmatpush3.msra.mxu0 %v1705_v39 }
 0x2cb   :  { %1344 = vmatprep.subr.mxu0 %v1556_v0 }
 0x2cc   :  { %1345 = vmatpush3.msra.mxu0 %v1714_v40 }
 0x2cd   :  { %1346 = vmatprep.subr.mxu0 %v1556_v0 }
 0x2ce   :  { %1347 = vmatpush3.msra.mxu0 %v1723_v41 }
 0x2cf   :  { %1348 = vmatprep.subr.mxu0 %v1556_v0 }
 0x2d0   :  { %1349 = vmatpush3.msra.mxu0 %v1732_v42 }
 0x2d1   :  { %1388 = vmatprep.subr.mxu0 %v1556_v0 }
 0x371   :  { %v554_v16 = vpop.f32.mrf.mxu0 }
 0x372   :  { %v558_v17 = vadd.f32 %v554_v16, %v487_v15 }
 0x373   :  { %v1282_v18 = vpop.f32.mrf.mxu0 }
 0x374   :  { %1474 = vtanh.f32 %v558_v17 }
 0x381   :  { %v1475_v19 = vpop.eup %1474 }
 0x382   :  { %1316 = vmatmul.mubr.f32.vlgmr.msra.gmra.mxu1 %v1475_v19 }
 0x383   :  { %1354 = vmatpush3.msra.mxu1 %v1608_v6  ;;  %1385 = vmatprep.mubr.msk.f32.mxu1 %vm1558_vm0, %v1556_v0 }
 0x384   :  { %1355 = vmatprep.subr.mxu1 %v1556_v0 }
 0x385   :  { %1356 = vmatpush3.msra.mxu1 %v1613_v7 }
 0x386   :  { %1357 = vmatprep.subr.mxu1 %v1556_v0 }
 0x387   :  { %1358 = vmatpush3.msra.mxu1 %v1620_v8 }
 0x388   :  { %1359 = vmatprep.subr.mxu1 %v1556_v0 }
 0x389   :  { %1360 = vmatpush3.msra.mxu1 %v1629_v14 }
 0x38a   :  { %1361 = vmatprep.subr.mxu1 %v1556_v0 }
 0x38b   :  { %1362 = vmatpush3.msra.mxu1 %v1636_v22 }
 0x38c   :  { %1363 = vmatprep.subr.mxu1 %v1556_v0 }
 0x38d   :  { %1364 = vmatpush3.msra.mxu1 %v1646_v28 }
 0x38e   :  { %1365 = vmatprep.subr.mxu1 %v1556_v0 }
 0x38f   :  { %1366 = vmatpush3.msra.mxu1 %v1655_v32 }
 0x390   :  { %1367 = vmatprep.subr.mxu1 %v1556_v0 }
 0x391   :  { %1368 = vmatpush3.msra.mxu1 %v1662_v34 }
 0x392   :  { %1369 = vmatprep.subr.mxu1 %v1556_v0 }
 0x393   :  { %1370 = vmatpush3.msra.mxu1 %v1669_v35 }
 0x394   :  { %1371 = vmatprep.subr.mxu1 %v1556_v0 }
 0x395   :  { %1372 = vmatpush3.msra.mxu1 %v1678_v36 }
 0x396   :  { %1373 = vmatprep.subr.mxu1 %v1556_v0 }
 0x397   :  { %1374 = vmatpush3.msra.mxu1 %v1687_v37 }
 0x398   :  { %1375 = vmatprep.subr.mxu1 %v1556_v0 }
 0x399   :  { %1376 = vmatpush3.msra.mxu1 %v1696_v38 }
 0x39a   :  { %1377 = vmatprep.subr.mxu1 %v1556_v0 }
 0x39b   :  { %1378 = vmatpush3.msra.mxu1 %v1705_v39 }
 0x39c   :  { %1379 = vmatprep.subr.mxu1 %v1556_v0 }
 0x39d   :  { %1380 = vmatpush3.msra.mxu1 %v1714_v40 }
 0x39e   :  { %1381 = vmatprep.subr.mxu1 %v1556_v0 }
 0x39f   :  { %1382 = vmatpush3.msra.mxu1 %v1723_v41 }
 0x3a0   :  { %1383 = vmatprep.subr.mxu1 %v1556_v0 }
 0x3a1   :  { %1384 = vmatpush3.msra.mxu1 %v1732_v42 }
 0x3a2   :  { %1423 = vmatprep.subr.mxu1 %v1556_v0 }
 0x442   :  { %v628_v21 = vpop.f32.mrf.mxu1 }
 0x443   :  { %v632_v23 = vadd.f32 %v628_v21, %v561_v20 }
 0x444   :  { %v1317_v24 = vpop.f32.mrf.mxu1 }
 0x445   :  { %1476 = vtanh.f32 %v632_v23 }
 0x452   :  { %v1477_v25 = vpop.eup %1476 }
 0x453   :  { %1351 = vmatmul.mubr.f32.vlgmr.msra.gmra.mxu0 %v1477_v25 }
 0x454   :  { %1389 = vmatpush3.msra.mxu0 %v1608_v6  ;;  %1420 = vmatprep.mubr.msk.f32.mxu0 %vm1558_vm0, %v1556_v0  ;;  %v635_v6 = vld [vmem:[#allocation3 + $0xa] sm:$0x3] }
 0x455   :  { %1390 = vmatprep.subr.mxu0 %v1556_v0 }
 0x456   :  { %1391 = vmatpush3.msra.mxu0 %v1613_v7 }
 0x457   :  { %1392 = vmatprep.subr.mxu0 %v1556_v0 }
 0x458   :  { %1393 = vmatpush3.msra.mxu0 %v1620_v8 }
 0x459   :  { %1394 = vmatprep.subr.mxu0 %v1556_v0 }
 0x45a   :  { %1395 = vmatpush3.msra.mxu0 %v1629_v14 }
 0x45b   :  { %1396 = vmatprep.subr.mxu0 %v1556_v0 }
 0x45c   :  { %1397 = vmatpush3.msra.mxu0 %v1636_v22 }
 0x45d   :  { %1398 = vmatprep.subr.mxu0 %v1556_v0 }
 0x45e   :  { %1399 = vmatpush3.msra.mxu0 %v1646_v28  ;;  %v873_v28 = vld [vmem:[%s2043_s4 + $0x68] sm:$0xff] }
 0x45f   :  { %1400 = vmatprep.subr.mxu0 %v1556_v0 }
 0x460   :  { %1401 = vmatpush3.msra.mxu0 %v1655_v32  ;;  %v869_v32 = vld [vmem:[%s2043_s4 + $0x48] sm:$0xff] }
 0x461   :  { %1402 = vmatprep.subr.mxu0 %v1556_v0 }
 0x462   :  { %1403 = vmatpush3.msra.mxu0 %v1662_v34 }
 0x463   :  { %1404 = vmatprep.subr.mxu0 %v1556_v0 }
 0x464   :  { %1405 = vmatpush3.msra.mxu0 %v1669_v35 }
 0x465   :  { %1406 = vmatprep.subr.mxu0 %v1556_v0 }
 0x466   :  { %1407 = vmatpush3.msra.mxu0 %v1678_v36 }
 0x467   :  { %1408 = vmatprep.subr.mxu0 %v1556_v0 }
 0x468   :  { %1409 = vmatpush3.msra.mxu0 %v1687_v37 }
 0x469   :  { %1410 = vmatprep.subr.mxu0 %v1556_v0 }
 0x46a   :  { %1411 = vmatpush3.msra.mxu0 %v1696_v38  ;;  %v868_v38 = vld [vmem:[%s2043_s4 + $0x40] sm:$0xff] }
 0x46b   :  { %1412 = vmatprep.subr.mxu0 %v1556_v0 }
 0x46c   :  { %1413 = vmatpush3.msra.mxu0 %v1705_v39  ;;  %v867_v39 = vld [vmem:[%s2043_s4 + $0x38] sm:$0xff] }
 0x46d   :  { %1414 = vmatprep.subr.mxu0 %v1556_v0 }
 0x46e   :  { %1415 = vmatpush3.msra.mxu0 %v1714_v40  ;;  %v866_v40 = vld [vmem:[%s2043_s4 + $0x30] sm:$0xff] }
 0x46f   :  { %1416 = vmatprep.subr.mxu0 %v1556_v0 }
 0x470   :  { %1417 = vmatpush3.msra.mxu0 %v1723_v41  ;;  %v865_v41 = vld [vmem:[%s2043_s4 + $0x28] sm:$0xff] }
 0x471   :  { %1418 = vmatprep.subr.mxu0 %v1556_v0 }
 0x472   :  { %1419 = vmatpush3.msra.mxu0 %v1732_v42  ;;  %v864_v42 = vld [vmem:[%s2043_s4 + $0x20] sm:$0xff]  ;;  %s1524_s4 = scalar_lea.vmem %s962_s22, 32 }
 0x473   :  { %p1525_p10 = scmp.ne.s32.totalorder %s962_s22, %s1524_s4  ;;  %p1530_p12 = scmp.lt.s32.totalorder %s1524_s4, %s1524_s4 }
 0x475   :  { %p1531_p13 = por %p1530_p12, %p1529_p11 }
 0x477   :  { %p1532_p0 = pnand %p1531_p13, %p1525_p10 }
 0x513   :  { %v702_v7 = vpop.f32.mrf.mxu0 }
 0x514   :  { %v706_v8 = vadd.f32 %v702_v7, %v635_v6 }
 0x515   :  { %v1352_v14 = vpop.f32.mrf.mxu0 }
 0x516   :  { %1478 = vtanh.f32 %v706_v8 }
 0x523   :  { %v1479_v22 = vpop.eup %1478 }
 0x524   :  { %1386 = vmatmul.mubr.f32.vlgmr.msra.gmra.mxu1 %v1479_v22 }
 0x525   :  { %1455 = vmatprep.mubr.msk.f32.mxu1 %vm1558_vm0, %v1556_v0  ;;  %1424 = vmatpush3.msra.mxu1 %v875_v26 }
 0x526   :  { %1425 = vmatprep.subr.mxu1 %v1556_v0 }
 0x527   :  { %1426 = vmatpush3.msra.mxu1 %v874_v27 }
 0x528   :  { %1427 = vmatprep.subr.mxu1 %v1556_v0 }
 0x529   :  { %1428 = vmatpush3.msra.mxu1 %v873_v28 }
 0x52a   :  { %1429 = vmatprep.subr.mxu1 %v1556_v0 }
 0x52b   :  { %1430 = vmatpush3.msra.mxu1 %v872_v29 }
 0x52c   :  { %1431 = vmatprep.subr.mxu1 %v1556_v0 }
 0x52d   :  { %1432 = vmatpush3.msra.mxu1 %v871_v30 }
 0x52e   :  { %1433 = vmatprep.subr.mxu1 %v1556_v0 }
 0x52f   :  { %1434 = vmatpush3.msra.mxu1 %v870_v31 }
 0x530   :  { %1435 = vmatprep.subr.mxu1 %v1556_v0 }
 0x531   :  { %1436 = vmatpush3.msra.mxu1 %v869_v32 }
 0x532   :  { %1437 = vmatprep.subr.mxu1 %v1556_v0 }
 0x533   :  { %1438 = vmatpush3.msra.mxu1 %v868_v38 }
 0x534   :  { %1439 = vmatprep.subr.mxu1 %v1556_v0 }
 0x535   :  { %1440 = vmatpush3.msra.mxu1 %v867_v39 }
 0x536   :  { %1441 = vmatprep.subr.mxu1 %v1556_v0 }
 0x537   :  { %1442 = vmatpush3.msra.mxu1 %v866_v40 }
 0x538   :  { %1443 = vmatprep.subr.mxu1 %v1556_v0 }
 0x539   :  { %1444 = vmatpush3.msra.mxu1 %v865_v41 }
 0x53a   :  { %1445 = vmatprep.subr.mxu1 %v1556_v0 }
 0x53b   :  { %1446 = vmatpush3.msra.mxu1 %v864_v42 }
 0x53c   :  { %1447 = vmatprep.subr.mxu1 %v1556_v0 }
 0x53d   :  { %1448 = vmatpush3.msra.mxu1 %v863_v43 }
 0x53e   :  { %1449 = vmatprep.subr.mxu1 %v1556_v0 }
 0x53f   :  { %1450 = vmatpush3.msra.mxu1 %v862_v44 }
 0x540   :  { %1451 = vmatprep.subr.mxu1 %v1556_v0 }
 0x541   :  { %1452 = vmatpush3.msra.mxu1 %v861_v45 }
 0x542   :  { %1453 = vmatprep.subr.mxu1 %v1556_v0 }
 0x543   :  { %1454 = vmatpush3.msra.mxu1 %v860_v46 }
 0x5e4   :  { %v776_v34 = vpop.f32.mrf.mxu1 }
 0x5e5   :  { %v780_v35 = vadd.f32 %v776_v34, %v709_v33 }
 0x5e6   :  { %v1387_v36 = vpop.f32.mrf.mxu1 }
 0x5e7   :  { %1480 = vtanh.f32 %v780_v35 }
 0x5f4   :  { %v1481_v37 = vpop.eup %1480 }
 0x5f5   :  { %1421 = vmatmul.mubr.f32.vlgmr.msra.gmra.mxu0 %v1481_v37 }
 0x6b5   :  { %v850_v48 = vpop.f32.mrf.mxu0 }
 0x6b6   :  { %v854_v49 = vadd.f32 %v850_v48, %v783_v47 }
 0x6b7   :  { %v1422_v50 = vpop.f32.mrf.mxu0 }
 0x6b8   :  { %1482 = vtanh.f32 %v854_v49 }
 0x6c5   :  { %v1483_v51 = vpop.eup %1482 }
 0x6c6   :  { %856 = vst [vmem:[#allocation2] sm:$0x3] %v1483_v51  ;;  %1456 = vmatmul.mubr.f32.vlgmr.msra.gmra.mxu1 %v1483_v51 }
 0x786   :  { %v949_v0 = vpop.f32.mrf.mxu1 }
 0x787   :  { %v950_v53 = vadd.f32 %v978_v52, %v949_v0 }
 0x788   :  { %v1457_v54 = vpop.f32.mrf.mxu1 }
 0x789   :  { %954 = vst.msk [vmem:[#allocation9] sm:$0x3] %vm953_vm2, %v950_v53 }
 0x78a   :  { %1535 = shalt.err (!%p1532_p0)
}
 0x78b   :  { %964 = dma.vmem_to_hbm [thread:$0]  %s962_s22, 32, %s2045_s6, [#allocation6]  }
 0x78c   :  { %1548 = dma.done.wait [#allocation6], 32  }
 0x78d   :  { %1549 = vsyncadd [#allocation6], 4294967264 }
 0x78e   :  { %968 = vsyncpa [#allocation5], 1 }
 0x78f   :  { %969 = vsyncpa [#allocation8], 1 }
 0x790   :  { %970 = vsyncpa [#allocation6], 1 }

// kernel: tpu_custom_call.1
= control target key start
LH: loop header
LB: loop body
LE: loop exit
PB: predicated region body
PF: predicated region fallthrough
CT: control target
= control target key end

     0   :  { %11 = vsyncpa [#allocation5], 0  ;;  %s2039_s0 = inlined_call_operand.hbm [shape: f32[8,2,16], index: 0, kind: input, shape index: {}]   ;;  %s2040_s1 = inlined_call_operand.hbm [shape: f32[16,128], index: 1, kind: input, shape index: {}]   ;;  %s2041_s2 = inlined_call_operand.vmem [shape: f32[1,128], index: 2, kind: input, shape index: {}]   ;;  %s2042_s3 = inlined_call_operand.vmem [shape: f32[128,128], index: 3, kind: input, shape index: {}]   ;;  %s2043_s4 = inlined_call_operand.vmem [shape: f32[128,8], index: 4, kind: input, shape index: {}]   ;;  %s2044_s5 = inlined_call_operand.vmem [shape: f32[1,8], index: 5, kind: input, shape index: {}]   ;;  %s2045_s6 = inlined_call_operand.hbm [shape: f32[2,8], index: 6, kind: output, shape index: {}]  }
   0x1   :  { %12 = vsyncpa [#allocation8], 0 }
   0x2   :  { %13 = vsyncpa [#allocation6], 0  ;;  %s1550_s21 = smov [#allocation4]  }
   0x3   :  { %s19_s22 = sshll.u32 %s1550_s21, 4  ;;  %s20_s22 = int_to_ptr.vmem [resolvable:$true] %s19_s22 }
   0x4   :  { %s1492_s23 = scalar_lea.vmem %s20_s22, 256  ;;  %p1497_p1 = scmp.lt.s32.totalorder %s20_s22, %s20_s22 }
   0x5   :  { %p1493_p0 = scmp.ne.s32.totalorder %s20_s22, %s1492_s23  ;;  %p1498_p2 = scmp.lt.s32.totalorder %s1492_s23, %s1492_s23 }
   0x7   :  { %p1499_p3 = por %p1498_p2, %p1497_p1 }
   0x9   :  { %p1500_p4 = pnand %p1499_p3, %p1493_p0 }
   0xb   :  { %1503 = shalt.err (!%p1500_p4)
}
   0xc   :  { %s1551_s24 = smov 32   ;;  %s1552_s25 = smov 2  }
   0xd   :  { %25 = dma.hbm_to_vmem [thread:$0]  %s2039_s0, 256, %s20_s22, [#allocation5], %s1551_s24, %s1551_s24, %s1552_s25  }
   0xe   :  { %s1553_s28 = smov [#allocation7]  }
   0xf   :  { %s31_s29 = sshll.u32 %s1553_s28, 4  ;;  %s32_s29 = int_to_ptr.vmem [resolvable:$true] %s31_s29 }
  0x10   :  { %s1512_s30 = scalar_lea.vmem %s32_s29, 256  ;;  %p1517_p6 = scmp.lt.s32.totalorder %s32_s29, %s32_s29 }
  0x11   :  { %p1513_p5 = scmp.ne.s32.totalorder %s32_s29, %s1512_s30  ;;  %p1518_p7 = scmp.lt.s32.totalorder %s1512_s30, %s1512_s30 }
  0x13   :  { %p1519_p8 = por %p1518_p7, %p1517_p6 }
  0x15   :  { %p1520_p9 = pnand %p1519_p8, %p1513_p5 }
  0x17   :  { %1523 = shalt.err (!%p1520_p9)
}
  0x18   :  { %s1554_s7 = smov 128   ;;  %s1555_s8 = smov 8  }
  0x19   :  { %37 = dma.hbm_to_vmem [thread:$0]  %s2040_s1, 256, %s32_s29, [#allocation8], %s1554_s7, %s1554_s7, %s1555_s8  }
  0x1a   :  { %1544 = dma.done.wait [#allocation5], 256  }
  0x1b   :  { %1545 = vsyncadd [#allocation5], 4294967040 }
  0x1c   :  { %1546 = dma.done.wait [#allocation8], 256  }
  0x1d   :  { %1547 = vsyncadd [#allocation8], 4294967040  ;;  %v1556_v0 = vmov 0.0   ;;  %v1557_v1 = vmov 1983009808   ;;  %v87_v3 = vlaneseq  ;;  %vm1558_vm0 = vmmov 0  }
  0x1e   :  { %1143 = vmatprep.subr.mxu1 %v1556_v0  ;;  %56 = vst [vmem:[#allocation2] sm:$0x3] %v1556_v0  ;;  %v85_v2 = vunpack.c.l.s4 %v1557_v1  ;;  %1175 = vmatprep.mubr.msk.f32.mxu1 %vm1558_vm0, %v1556_v0  ;;  %v1608_v6 = vld [vmem:[%s2042_s3 + $0x78] sm:$0xff]  ;;  %v1613_v7 = vld [vmem:[%s2042_s3 + $0x70] sm:$0xff]  ;;  %v1620_v8 = vld [vmem:[%s2042_s3 + $0x68] sm:$0xff]  ;;  %vm116_vm1 = vcmask 130048  }
  0x1f   :  { %v88_v5 = vshrl.u32 %v87_v3, 7  ;;  %1144 = vmatpush3.msra.mxu1 %v1608_v6  ;;  %v66_v9 = vld [vmem:[#allocation7 + $0x8] sm:$0xff]  ;;  %v65_v11 = vld [vmem:[#allocation7] sm:$0xff]  ;;  %v57_v12 = vld [vmem:[#allocation4] sm:$0x3]  ;;  %s1559_s21 = smov [#allocation9]  }
  0x20   :  { %v86_v4 = vunpack.c.0.s8 %v85_v2  ;;  %1145 = vmatprep.subr.mxu1 %v1556_v0  ;;  %1136 = vmatprep.subr.mxu0 %v66_v9  ;;  %v58_v13 = vld [vmem:[#allocation4 + $0x2] sm:$0x3]  ;;  %v1629_v14 = vld [vmem:[%s2042_s3 + $0x60] sm:$0xff]  ;;  %v59_v15 = vld [vmem:[#allocation4 + $0x4] sm:$0x3]  ;;  %s961_s22 = sshll.u32 %s1559_s21, 4  ;;  %s962_s22 = int_to_ptr.vmem [resolvable:$true] %s961_s22 }
  0x21   :  { %1146 = vmatpush3.msra.mxu1 %v1613_v7  ;;  %1137 = vmatpush3.msra.mxu0 %v66_v9  ;;  %v60_v16 = vld [vmem:[#allocation4 + $0x6] sm:$0x3]  ;;  %v82_v17 = vcombine.low %v57_v12, %v58_v13  ;;  %v61_v19 = vld [vmem:[#allocation4 + $0x8] sm:$0x3]  ;;  %v62_v20 = vld [vmem:[#allocation4 + $0xa] sm:$0x3]  ;;  %p1529_p11 = scmp.lt.s32.totalorder %s962_s22, %s962_s22 }
  0x22   :  { %v1622_v10 = vsub.s32 %v86_v4, %v88_v5  ;;  %1147 = vmatprep.subr.mxu1 %v1556_v0  ;;  %1138 = vmatprep.subr.mxu0 %v65_v11  ;;  %v83_v18 = vcombine.low %v59_v15, %v60_v16  ;;  %v63_v21 = vld [vmem:[#allocation4 + $0xc] sm:$0x3]  ;;  %v64_v24 = vld [vmem:[#allocation4 + $0xe] sm:$0x3]  ;;  %v99_v25 = vcombine.low %v61_v19, %v62_v20  ;;  %v1646_v28 = vld [vmem:[%s2042_s3 + $0x50] sm:$0xff]  ;;  %vm953_vm2 = vcmask 58368  }
  0x23   :  { %1148 = vmatpush3.msra.mxu1 %v1620_v8  ;;  %v1636_v22 = vld [vmem:[%s2042_s3 + $0x58] sm:$0xff]  ;;  %1139 = vmatpush3.msra.mxu0 %v65_v11  ;;  %v100_v27 = vcombine.low %v63_v21, %v64_v24  ;;  %v1655_v32 = vld [vmem:[%s2042_s3 + $0x48] sm:$0xff]  ;;  %v1662_v34 = vld [vmem:[%s2042_s3 + $0x40] sm:$0xff] }
  0x24   :  { %1149 = vmatprep.subr.mxu1 %v1556_v0  ;;  %v90_v23 = vrot.slane %v82_v17, %v1622_v10  ;;  %v97_v26 = vrot.slane %v83_v18, %v1622_v10  ;;  %1178 = vmatprep.subr.mxu0 %v1556_v0  ;;  %v107_v29 = vrot.slane %v99_v25, %v1622_v10  ;;  %v1669_v35 = vld [vmem:[%s2042_s3 + $0x38] sm:$0xff]  ;;  %v1678_v36 = vld [vmem:[%s2042_s3 + $0x30] sm:$0xff]  ;;  %v1687_v37 = vld [vmem:[%s2042_s3 + $0x28] sm:$0xff] }
  0x25   :  { %1150 = vmatpush3.msra.mxu1 %v1629_v14  ;;  %v114_v31 = vrot.slane %v100_v27, %v1622_v10  ;;  %v1696_v38 = vld [vmem:[%s2042_s3 + $0x20] sm:$0xff]  ;;  %v1705_v39 = vld [vmem:[%s2042_s3 + $0x18] sm:$0xff]  ;;  %v1714_v40 = vld [vmem:[%s2042_s3 + $0x10] sm:$0xff] }
  0x26   :  { %1151 = vmatprep.subr.mxu1 %v1556_v0  ;;  %v98_v30 = vcombine.low %v90_v23, %v97_v26  ;;  %v1723_v41 = vld [vmem:[%s2042_s3 + $0x8] sm:$0xff]  ;;  %v1732_v42 = vld [vmem:[%s2042_s3] sm:$0xff]  ;;  %v875_v26 = vld [vmem:[%s2043_s4 + $0x78] sm:$0xff] }
  0x27   :  { %1152 = vmatpush3.msra.mxu1 %v1636_v22  ;;  %v115_v33 = vcombine.low %v107_v29, %v114_v31  ;;  %v248_v43 = vld [vmem:[#allocation2] sm:$0x3]  ;;  %v874_v27 = vld [vmem:[%s2043_s4 + $0x70] sm:$0xff] }
  0x28   :  { %1153 = vmatprep.subr.mxu1 %v1556_v0  ;;  %1140 = vmatprep.mubr.msk.f32.mxu0 %vm116_vm1, %v98_v30  ;;  %v971_v44 = vld [vmem:[%s2041_s2] ss:$0 sm:$0xff]  ;;  %v871_v30 = vld [vmem:[%s2043_s4 + $0x58] sm:$0xff]  ;;  %v870_v31 = vld [vmem:[%s2043_s4 + $0x50] sm:$0xff] }
  0x29   :  { %1154 = vmatpush3.msra.mxu1 %v1646_v28  ;;  %1141 = vmatmul.mubr.msk.f32.vlgmr.msra.gmra.mxu0 %vm116_vm1, %v115_v33  ;;  %v872_v29 = vld [vmem:[%s2043_s4 + $0x60] sm:$0xff] }
  0x2a   :  { %1155 = vmatprep.subr.mxu1 %v1556_v0  ;;  %1179 = vmatpush3.msra.mxu0 %v1608_v6 }
  0x2b   :  { %1156 = vmatpush3.msra.mxu1 %v1655_v32  ;;  %1180 = vmatprep.subr.mxu0 %v1556_v0 }
  0x2c   :  { %1157 = vmatprep.subr.mxu1 %v1556_v0  ;;  %1181 = vmatpush3.msra.mxu0 %v1613_v7 }
  0x2d   :  { %1158 = vmatpush3.msra.mxu1 %v1662_v34  ;;  %1182 = vmatprep.subr.mxu0 %v1556_v0 }
  0x2e   :  { %1159 = vmatprep.subr.mxu1 %v1556_v0  ;;  %1183 = vmatpush3.msra.mxu0 %v1620_v8 }
  0x2f   :  { %1160 = vmatpush3.msra.mxu1 %v1669_v35  ;;  %1184 = vmatprep.subr.mxu0 %v1556_v0 }
  0x30   :  { %1161 = vmatprep.subr.mxu1 %v1556_v0  ;;  %1185 = vmatpush3.msra.mxu0 %v1629_v14 }
  0x31   :  { %1162 = vmatpush3.msra.mxu1 %v1678_v36  ;;  %1186 = vmatprep.subr.mxu0 %v1556_v0 }
  0x32   :  { %1163 = vmatprep.subr.mxu1 %v1556_v0  ;;  %1187 = vmatpush3.msra.mxu0 %v1636_v22 }
  0x33   :  { %1164 = vmatpush3.msra.mxu1 %v1687_v37  ;;  %1188 = vmatprep.subr.mxu0 %v1556_v0 }
  0x34   :  { %1165 = vmatprep.subr.mxu1 %v1556_v0  ;;  %1189 = vmatpush3.msra.mxu0 %v1646_v28 }
  0x35   :  { %1166 = vmatpush3.msra.mxu1 %v1696_v38  ;;  %1190 = vmatprep.subr.mxu0 %v1556_v0 }
  0x36   :  { %1167 = vmatprep.subr.mxu1 %v1556_v0  ;;  %1191 = vmatpush3.msra.mxu0 %v1655_v32 }
  0x37   :  { %1168 = vmatpush3.msra.mxu1 %v1705_v39  ;;  %1192 = vmatprep.subr.mxu0 %v1556_v0 }
  0x38   :  { %1169 = vmatprep.subr.mxu1 %v1556_v0  ;;  %1193 = vmatpush3.msra.mxu0 %v1662_v34 }
  0x39   :  { %1170 = vmatpush3.msra.mxu1 %v1714_v40  ;;  %1194 = vmatprep.subr.mxu0 %v1556_v0 }
  0x3a   :  { %1171 = vmatprep.subr.mxu1 %v1556_v0  ;;  %1195 = vmatpush3.msra.mxu0 %v1669_v35 }
  0x3b   :  { %1172 = vmatpush3.msra.mxu1 %v1723_v41  ;;  %1196 = vmatprep.subr.mxu0 %v1556_v0 }
  0x3c   :  { %1173 = vmatprep.subr.mxu1 %v1556_v0  ;;  %1197 = vmatpush3.msra.mxu0 %v1678_v36 }
  0x3d   :  { %1174 = vmatpush3.msra.mxu1 %v1732_v42  ;;  %1198 = vmatprep.subr.mxu0 %v1556_v0 }
  0x3e   :  { %1176 = vmatmul.mubr.f32.vlgmr.msra.gmra.mxu1 %v248_v43  ;;  %1210 = vmatprep.mubr.msk.f32.mxu0 %vm1558_vm0, %v1556_v0  ;;  %v863_v43 = vld [vmem:[%s2043_s4 + $0x18] sm:$0xff] }
  0x3f   :  { %1199 = vmatpush3.msra.mxu0 %v1687_v37  ;;  %1213 = vmatprep.subr.mxu1 %v1556_v0 }
  0x40   :  { %1200 = vmatprep.subr.mxu0 %v1556_v0  ;;  %1214 = vmatpush3.msra.mxu1 %v1608_v6 }
  0x41   :  { %1201 = vmatpush3.msra.mxu0 %v1696_v38  ;;  %1215 = vmatprep.subr.mxu1 %v1556_v0 }
  0x42   :  { %1202 = vmatprep.subr.mxu0 %v1556_v0  ;;  %1216 = vmatpush3.msra.mxu1 %v1613_v7 }
  0x43   :  { %1203 = vmatpush3.msra.mxu0 %v1705_v39  ;;  %1217 = vmatprep.subr.mxu1 %v1556_v0 }
  0x44   :  { %1204 = vmatprep.subr.mxu0 %v1556_v0  ;;  %1218 = vmatpush3.msra.mxu1 %v1620_v8 }
  0x45   :  { %1205 = vmatpush3.msra.mxu0 %v1714_v40  ;;  %1219 = vmatprep.subr.mxu1 %v1556_v0 }
  0x46   :  { %1206 = vmatprep.subr.mxu0 %v1556_v0  ;;  %1220 = vmatpush3.msra.mxu1 %v1629_v14 }
  0x47   :  { %1207 = vmatpush3.msra.mxu0 %v1723_v41  ;;  %1221 = vmatprep.subr.mxu1 %v1556_v0 }
  0x48   :  { %1208 = vmatprep.subr.mxu0 %v1556_v0  ;;  %1222 = vmatpush3.msra.mxu1 %v1636_v22 }
  0x49   :  { %1209 = vmatpush3.msra.mxu0 %v1732_v42  ;;  %1223 = vmatprep.subr.mxu1 %v1556_v0 }
  0x4a   :  { %1224 = vmatpush3.msra.mxu1 %v1646_v28  ;;  %1245 = vmatprep.mubr.msk.f32.mxu1 %vm1558_vm0, %v1556_v0 }
  0x4b   :  { %1225 = vmatprep.subr.mxu1 %v1556_v0  ;;  %1248 = vmatprep.subr.mxu0 %v1556_v0 }
  0x4c   :  { %1226 = vmatpush3.msra.mxu1 %v1655_v32 }
  0x4d   :  { %1227 = vmatprep.subr.mxu1 %v1556_v0 }
  0x4e   :  { %1228 = vmatpush3.msra.mxu1 %v1662_v34 }
  0x4f   :  { %1229 = vmatprep.subr.mxu1 %v1556_v0 }
  0x50   :  { %1230 = vmatpush3.msra.mxu1 %v1669_v35 }
  0x51   :  { %1231 = vmatprep.subr.mxu1 %v1556_v0 }
  0x52   :  { %1232 = vmatpush3.msra.mxu1 %v1678_v36 }
  0x53   :  { %1233 = vmatprep.subr.mxu1 %v1556_v0 }
  0x54   :  { %1234 = vmatpush3.msra.mxu1 %v1687_v37 }
  0x55   :  { %1235 = vmatprep.subr.mxu1 %v1556_v0 }
  0x56   :  { %1236 = vmatpush3.msra.mxu1 %v1696_v38 }
  0x57   :  { %1237 = vmatprep.subr.mxu1 %v1556_v0 }
  0x58   :  { %1238 = vmatpush3.msra.mxu1 %v1705_v39 }
  0x59   :  { %1239 = vmatprep.subr.mxu1 %v1556_v0 }
  0x5a   :  { %1240 = vmatpush3.msra.mxu1 %v1714_v40 }
  0x5b   :  { %1241 = vmatprep.subr.mxu1 %v1556_v0 }
  0x5c   :  { %1242 = vmatpush3.msra.mxu1 %v1723_v41 }
  0x5d   :  { %1243 = vmatprep.subr.mxu1 %v1556_v0 }
  0x5e   :  { %1244 = vmatpush3.msra.mxu1 %v1732_v42 }
  0x5f   :  { %1283 = vmatprep.subr.mxu1 %v1556_v0 }
  0xe9   :  { %v1142_v45 = vpop.f32.mrf.mxu0 }
  0xea   :  { %v193_v46 = vadd.f32 %v1142_v45, %v971_v44  ;;  %v861_v45 = vld [vmem:[%s2043_s4 + $0x8] sm:$0xff] }
  0xeb   :  { %v187_v47 = vpop.f32.mrf.mxu0 }
  0xec   :  { %v215_v48 = vcombine.high %v193_v46, %v193_v46  ;;  %v222_v49 = vrot.slane %v193_v46, %v1622_v10  ;;  %976 = vst.sshfl [vmem:[#allocation3 + $0x8] sm:$0x3 pattern:$0x76325410] %v193_v46  ;;  %v188_v50 = vadd.f32 %v971_v44, %v187_v47  ;;  %v862_v44 = vld [vmem:[%s2043_s4 + $0x10] sm:$0xff]  ;;  %v860_v46 = vld [vmem:[%s2043_s4] sm:$0xff] }
  0xee   :  { %v229_v51 = vrot.slane %v215_v48, %v1622_v10  ;;  %v230_v52 = vcombine.high %v222_v49, %v222_v49  ;;  %977 = vst.sshfl [vmem:[#allocation3 + $0xc] sm:$0x3 pattern:$0x76325410] %v215_v48  ;;  %v198_v53 = vcombine.high %v188_v50, %v188_v50  ;;  %v205_v54 = vrot.slane %v188_v50, %v1622_v10 }
  0xef   :  { %974 = vst.sshfl [vmem:[#allocation3] sm:$0x3 pattern:$0x76325410] %v188_v50 }
  0xf0   :  { %v231_v55 = vcombine.high %v229_v51, %v229_v51  ;;  %245 = vst [vmem:[#allocation3 + $0xa] sm:$0x3] %v230_v52  ;;  %v212_v56 = vrot.slane %v198_v53, %v1622_v10  ;;  %v213_v57 = vcombine.high %v205_v54, %v205_v54  ;;  %975 = vst.sshfl [vmem:[#allocation3 + $0x4] sm:$0x3 pattern:$0x76325410] %v198_v53 }
  0xf1   :  { %v978_v52 = vld [vmem:[%s2044_s5] ss:$0 sm:$0xff] }
  0xf2   :  { %247 = vst [vmem:[#allocation3 + $0xe] sm:$0x3] %v231_v55  ;;  %v214_v58 = vcombine.high %v212_v56, %v212_v56  ;;  %241 = vst [vmem:[#allocation3 + $0x2] sm:$0x3] %v213_v57 }
  0xf3   :  { %v561_v20 = vld [vmem:[#allocation3 + $0x8] sm:$0x3] }
  0xf4   :  { %243 = vst [vmem:[#allocation3 + $0x6] sm:$0x3] %v214_v58 }
  0xf5   :  { %v709_v33 = vld [vmem:[#allocation3 + $0xc] sm:$0x3] }
  0xf6   :  { %v249_v59 = vld [vmem:[#allocation3] sm:$0x3] }
  0xf7   :  { %v413_v9 = vld [vmem:[#allocation3 + $0x4] sm:$0x3] }
  0xf9   :  { %v339_v1 = vld [vmem:[#allocation3 + $0x2] sm:$0x3]  ;;  %v783_v47 = vld [vmem:[#allocation3 + $0xe] sm:$0x3] }
  0xfb   :  { %v487_v15 = vld [vmem:[#allocation3 + $0x6] sm:$0x3] }
  0xfe   :  { %v332_v60 = vpop.f32.mrf.mxu1 }
  0xff   :  { %v336_v61 = vadd.f32 %v332_v60, %v249_v59 }
 0x100   :  { %v1177_v62 = vpop.f32.mrf.mxu1 }
 0x101   :  { %1468 = vtanh.f32 %v336_v61 }
 0x10e   :  { %v1469_v63 = vpop.eup %1468 }
 0x10f   :  { %1211 = vmatmul.mubr.f32.vlgmr.msra.gmra.mxu0 %v1469_v63 }
 0x110   :  { %1249 = vmatpush3.msra.mxu0 %v1608_v6  ;;  %1280 = vmatprep.mubr.msk.f32.mxu0 %vm1558_vm0, %v1556_v0 }
 0x111   :  { %1250 = vmatprep.subr.mxu0 %v1556_v0 }
 0x112   :  { %1251 = vmatpush3.msra.mxu0 %v1613_v7 }
 0x113   :  { %1252 = vmatprep.subr.mxu0 %v1556_v0 }
 0x114   :  { %1253 = vmatpush3.msra.mxu0 %v1620_v8 }
 0x115   :  { %1254 = vmatprep.subr.mxu0 %v1556_v0 }
 0x116   :  { %1255 = vmatpush3.msra.mxu0 %v1629_v14 }
 0x117   :  { %1256 = vmatprep.subr.mxu0 %v1556_v0 }
 0x118   :  { %1257 = vmatpush3.msra.mxu0 %v1636_v22 }
 0x119   :  { %1258 = vmatprep.subr.mxu0 %v1556_v0 }
 0x11a   :  { %1259 = vmatpush3.msra.mxu0 %v1646_v28 }
 0x11b   :  { %1260 = vmatprep.subr.mxu0 %v1556_v0 }
 0x11c   :  { %1261 = vmatpush3.msra.mxu0 %v1655_v32 }
 0x11d   :  { %1262 = vmatprep.subr.mxu0 %v1556_v0 }
 0x11e   :  { %1263 = vmatpush3.msra.mxu0 %v1662_v34 }
 0x11f   :  { %1264 = vmatprep.subr.mxu0 %v1556_v0 }
 0x120   :  { %1265 = vmatpush3.msra.mxu0 %v1669_v35 }
 0x121   :  { %1266 = vmatprep.subr.mxu0 %v1556_v0 }
 0x122   :  { %1267 = vmatpush3.msra.mxu0 %v1678_v36 }
 0x123   :  { %1268 = vmatprep.subr.mxu0 %v1556_v0 }
 0x124   :  { %1269 = vmatpush3.msra.mxu0 %v1687_v37 }
 0x125   :  { %1270 = vmatprep.subr.mxu0 %v1556_v0 }
 0x126   :  { %1271 = vmatpush3.msra.mxu0 %v1696_v38 }
 0x127   :  { %1272 = vmatprep.subr.mxu0 %v1556_v0 }
 0x128   :  { %1273 = vmatpush3.msra.mxu0 %v1705_v39 }
 0x129   :  { %1274 = vmatprep.subr.mxu0 %v1556_v0 }
 0x12a   :  { %1275 = vmatpush3.msra.mxu0 %v1714_v40 }
 0x12b   :  { %1276 = vmatprep.subr.mxu0 %v1556_v0 }
 0x12c   :  { %1277 = vmatpush3.msra.mxu0 %v1723_v41 }
 0x12d   :  { %1278 = vmatprep.subr.mxu0 %v1556_v0 }
 0x12e   :  { %1279 = vmatpush3.msra.mxu0 %v1732_v42 }
 0x12f   :  { %1318 = vmatprep.subr.mxu0 %v1556_v0 }
 0x1cf   :  { %v406_v2 = vpop.f32.mrf.mxu0 }
 0x1d0   :  { %v410_v3 = vadd.f32 %v406_v2, %v339_v1 }
 0x1d1   :  { %v1212_v4 = vpop.f32.mrf.mxu0 }
 0x1d2   :  { %1470 = vtanh.f32 %v410_v3 }
 0x1df   :  { %v1471_v5 = vpop.eup %1470 }
 0x1e0   :  { %1246 = vmatmul.mubr.f32.vlgmr.msra.gmra.mxu1 %v1471_v5 }
 0x1e1   :  { %1284 = vmatpush3.msra.mxu1 %v1608_v6  ;;  %1315 = vmatprep.mubr.msk.f32.mxu1 %vm1558_vm0, %v1556_v0 }
 0x1e2   :  { %1285 = vmatprep.subr.mxu1 %v1556_v0 }
 0x1e3   :  { %1286 = vmatpush3.msra.mxu1 %v1613_v7 }
 0x1e4   :  { %1287 = vmatprep.subr.mxu1 %v1556_v0 }
 0x1e5   :  { %1288 = vmatpush3.msra.mxu1 %v1620_v8 }
 0x1e6   :  { %1289 = vmatprep.subr.mxu1 %v1556_v0 }
 0x1e7   :  { %1290 = vmatpush3.msra.mxu1 %v1629_v14 }
 0x1e8   :  { %1291 = vmatprep.subr.mxu1 %v1556_v0 }
 0x1e9   :  { %1292 = vmatpush3.msra.mxu1 %v1636_v22 }
 0x1ea   :  { %1293 = vmatprep.subr.mxu1 %v1556_v0 }
 0x1eb   :  { %1294 = vmatpush3.msra.mxu1 %v1646_v28 }
 0x1ec   :  { %1295 = vmatprep.subr.mxu1 %v1556_v0 }
 0x1ed   :  { %1296 = vmatpush3.msra.mxu1 %v1655_v32 }
 0x1ee   :  { %1297 = vmatprep.subr.mxu1 %v1556_v0 }
 0x1ef   :  { %1298 = vmatpush3.msra.mxu1 %v1662_v34 }
 0x1f0   :  { %1299 = vmatprep.subr.mxu1 %v1556_v0 }
 0x1f1   :  { %1300 = vmatpush3.msra.mxu1 %v1669_v35 }
 0x1f2   :  { %1301 = vmatprep.subr.mxu1 %v1556_v0 }
 0x1f3   :  { %1302 = vmatpush3.msra.mxu1 %v1678_v36 }
 0x1f4   :  { %1303 = vmatprep.subr.mxu1 %v1556_v0 }
 0x1f5   :  { %1304 = vmatpush3.msra.mxu1 %v1687_v37 }
 0x1f6   :  { %1305 = vmatprep.subr.mxu1 %v1556_v0 }
 0x1f7   :  { %1306 = vmatpush3.msra.mxu1 %v1696_v38 }
 0x1f8   :  { %1307 = vmatprep.subr.mxu1 %v1556_v0 }
 0x1f9   :  { %1308 = vmatpush3.msra.mxu1 %v1705_v39 }
 0x1fa   :  { %1309 = vmatprep.subr.mxu1 %v1556_v0 }
 0x1fb   :  { %1310 = vmatpush3.msra.mxu1 %v1714_v40 }
 0x1fc   :  { %1311 = vmatprep.subr.mxu1 %v1556_v0 }
 0x1fd   :  { %1312 = vmatpush3.msra.mxu1 %v1723_v41 }
 0x1fe   :  { %1313 = vmatprep.subr.mxu1 %v1556_v0 }
 0x1ff   :  { %1314 = vmatpush3.msra.mxu1 %v1732_v42 }
 0x200   :  { %1353 = vmatprep.subr.mxu1 %v1556_v0 }
 0x2a0   :  { %v480_v10 = vpop.f32.mrf.mxu1 }
 0x2a1   :  { %v484_v11 = vadd.f32 %v480_v10, %v413_v9 }
 0x2a2   :  { %v1247_v12 = vpop.f32.mrf.mxu1 }
 0x2a3   :  { %1472 = vtanh.f32 %v484_v11 }
 0x2b0   :  { %v1473_v13 = vpop.eup %1472 }
 0x2b1   :  { %1281 = vmatmul.mubr.f32.vlgmr.msra.gmra.mxu0 %v1473_v13 }
 0x2b2   :  { %1319 = vmatpush3.msra.mxu0 %v1608_v6  ;;  %1350 = vmatprep.mubr.msk.f32.mxu0 %vm1558_vm0, %v1556_v0 }
 0x2b3   :  { %1320 = vmatprep.subr.mxu0 %v1556_v0 }
 0x2b4   :  { %1321 = vmatpush3.msra.mxu0 %v1613_v7 }
 0x2b5   :  { %1322 = vmatprep.subr.mxu0 %v1556_v0 }
 0x2b6   :  { %1323 = vmatpush3.msra.mxu0 %v1620_v8 }
 0x2b7   :  { %1324 = vmatprep.subr.mxu0 %v1556_v0 }
 0x2b8   :  { %1325 = vmatpush3.msra.mxu0 %v1629_v14 }
 0x2b9   :  { %1326 = vmatprep.subr.mxu0 %v1556_v0 }
 0x2ba   :  { %1327 = vmatpush3.msra.mxu0 %v1636_v22 }
 0x2bb   :  { %1328 = vmatprep.subr.mxu0 %v1556_v0 }
 0x2bc   :  { %1329 = vmatpush3.msra.mxu0 %v1646_v28 }
 0x2bd   :  { %1330 = vmatprep.subr.mxu0 %v1556_v0 }
 0x2be   :  { %1331 = vmatpush3.msra.mxu0 %v1655_v32 }
 0x2bf   :  { %1332 = vmatprep.subr.mxu0 %v1556_v0 }
 0x2c0   :  { %1333 = vmatpush3.msra.mxu0 %v1662_v34 }
 0x2c1   :  { %1334 = vmatprep.subr.mxu0 %v1556_v0 }
 0x2c2   :  { %1335 = vmatpush3.msra.mxu0 %v1669_v35 }
 0x2c3   :  { %1336 = vmatprep.subr.mxu0 %v1556_v0 }
 0x2c4   :  { %1337 = vmatpush3.msra.mxu0 %v1678_v36 }
 0x2c5   :  { %1338 = vmatprep.subr.mxu0 %v1556_v0 }
 0x2c6   :  { %1339 = vmatpush3.msra.mxu0 %v1687_v37 }
 0x2c7   :  { %1340 = vmatprep.subr.mxu0 %v1556_v0 }
 0x2c8   :  { %1341 = vmatpush3.msra.mxu0 %v1696_v38 }
 0x2c9   :  { %1342 = vmatprep.subr.mxu0 %v1556_v0 }
 0x2ca   :  { %1343 = vmatpush3.msra.mxu0 %v1705_v39 }
 0x2cb   :  { %1344 = vmatprep.subr.mxu0 %v1556_v0 }
 0x2cc   :  { %1345 = vmatpush3.msra.mxu0 %v1714_v40 }
 0x2cd   :  { %1346 = vmatprep.subr.mxu0 %v1556_v0 }
 0x2ce   :  { %1347 = vmatpush3.msra.mxu0 %v1723_v41 }
 0x2cf   :  { %1348 = vmatprep.subr.mxu0 %v1556_v0 }
 0x2d0   :  { %1349 = vmatpush3.msra.mxu0 %v1732_v42 }
 0x2d1   :  { %1388 = vmatprep.subr.mxu0 %v1556_v0 }
 0x371   :  { %v554_v16 = vpop.f32.mrf.mxu0 }
 0x372   :  { %v558_v17 = vadd.f32 %v554_v16, %v487_v15 }
 0x373   :  { %v1282_v18 = vpop.f32.mrf.mxu0 }
 0x374   :  { %1474 = vtanh.f32 %v558_v17 }
 0x381   :  { %v1475_v19 = vpop.eup %1474 }
 0x382   :  { %1316 = vmatmul.mubr.f32.vlgmr.msra.gmra.mxu1 %v1475_v19 }
 0x383   :  { %1354 = vmatpush3.msra.mxu1 %v1608_v6  ;;  %1385 = vmatprep.mubr.msk.f32.mxu1 %vm1558_vm0, %v1556_v0 }
 0x384   :  { %1355 = vmatprep.subr.mxu1 %v1556_v0 }
 0x385   :  { %1356 = vmatpush3.msra.mxu1 %v1613_v7 }
 0x386   :  { %1357 = vmatprep.subr.mxu1 %v1556_v0 }
 0x387   :  { %1358 = vmatpush3.msra.mxu1 %v1620_v8 }
 0x388   :  { %1359 = vmatprep.subr.mxu1 %v1556_v0 }
 0x389   :  { %1360 = vmatpush3.msra.mxu1 %v1629_v14 }
 0x38a   :  { %1361 = vmatprep.subr.mxu1 %v1556_v0 }
 0x38b   :  { %1362 = vmatpush3.msra.mxu1 %v1636_v22 }
 0x38c   :  { %1363 = vmatprep.subr.mxu1 %v1556_v0 }
 0x38d   :  { %1364 = vmatpush3.msra.mxu1 %v1646_v28 }
 0x38e   :  { %1365 = vmatprep.subr.mxu1 %v1556_v0 }
 0x38f   :  { %1366 = vmatpush3.msra.mxu1 %v1655_v32 }
 0x390   :  { %1367 = vmatprep.subr.mxu1 %v1556_v0 }
 0x391   :  { %1368 = vmatpush3.msra.mxu1 %v1662_v34 }
 0x392   :  { %1369 = vmatprep.subr.mxu1 %v1556_v0 }
 0x393   :  { %1370 = vmatpush3.msra.mxu1 %v1669_v35 }
 0x394   :  { %1371 = vmatprep.subr.mxu1 %v1556_v0 }
 0x395   :  { %1372 = vmatpush3.msra.mxu1 %v1678_v36 }
 0x396   :  { %1373 = vmatprep.subr.mxu1 %v1556_v0 }
 0x397   :  { %1374 = vmatpush3.msra.mxu1 %v1687_v37 }
 0x398   :  { %1375 = vmatprep.subr.mxu1 %v1556_v0 }
 0x399   :  { %1376 = vmatpush3.msra.mxu1 %v1696_v38 }
 0x39a   :  { %1377 = vmatprep.subr.mxu1 %v1556_v0 }
 0x39b   :  { %1378 = vmatpush3.msra.mxu1 %v1705_v39 }
 0x39c   :  { %1379 = vmatprep.subr.mxu1 %v1556_v0 }
 0x39d   :  { %1380 = vmatpush3.msra.mxu1 %v1714_v40 }
 0x39e   :  { %1381 = vmatprep.subr.mxu1 %v1556_v0 }
 0x39f   :  { %1382 = vmatpush3.msra.mxu1 %v1723_v41 }
 0x3a0   :  { %1383 = vmatprep.subr.mxu1 %v1556_v0 }
 0x3a1   :  { %1384 = vmatpush3.msra.mxu1 %v1732_v42 }
 0x3a2   :  { %1423 = vmatprep.subr.mxu1 %v1556_v0 }
 0x442   :  { %v628_v21 = vpop.f32.mrf.mxu1 }
 0x443   :  { %v632_v23 = vadd.f32 %v628_v21, %v561_v20 }
 0x444   :  { %v1317_v24 = vpop.f32.mrf.mxu1 }
 0x445   :  { %1476 = vtanh.f32 %v632_v23 }
 0x452   :  { %v1477_v25 = vpop.eup %1476 }
 0x453   :  { %1351 = vmatmul.mubr.f32.vlgmr.msra.gmra.mxu0 %v1477_v25 }
 0x454   :  { %1389 = vmatpush3.msra.mxu0 %v1608_v6  ;;  %1420 = vmatprep.mubr.msk.f32.mxu0 %vm1558_vm0, %v1556_v0  ;;  %v635_v6 = vld [vmem:[#allocation3 + $0xa] sm:$0x3] }
 0x455   :  { %1390 = vmatprep.subr.mxu0 %v1556_v0 }
 0x456   :  { %1391 = vmatpush3.msra.mxu0 %v1613_v7 }
 0x457   :  { %1392 = vmatprep.subr.mxu0 %v1556_v0 }
 0x458   :  { %1393 = vmatpush3.msra.mxu0 %v1620_v8 }
 0x459   :  { %1394 = vmatprep.subr.mxu0 %v1556_v0 }
 0x45a   :  { %1395 = vmatpush3.msra.mxu0 %v1629_v14 }
 0x45b   :  { %1396 = vmatprep.subr.mxu0 %v1556_v0 }
 0x45c   :  { %1397 = vmatpush3.msra.mxu0 %v1636_v22 }
 0x45d   :  { %1398 = vmatprep.subr.mxu0 %v1556_v0 }
 0x45e   :  { %1399 = vmatpush3.msra.mxu0 %v1646_v28  ;;  %v873_v28 = vld [vmem:[%s2043_s4 + $0x68] sm:$0xff] }
 0x45f   :  { %1400 = vmatprep.subr.mxu0 %v1556_v0 }
 0x460   :  { %1401 = vmatpush3.msra.mxu0 %v1655_v32  ;;  %v869_v32 = vld [vmem:[%s2043_s4 + $0x48] sm:$0xff] }
 0x461   :  { %1402 = vmatprep.subr.mxu0 %v1556_v0 }
 0x462   :  { %1403 = vmatpush3.msra.mxu0 %v1662_v34 }
 0x463   :  { %1404 = vmatprep.subr.mxu0 %v1556_v0 }
 0x464   :  { %1405 = vmatpush3.msra.mxu0 %v1669_v35 }
 0x465   :  { %1406 = vmatprep.subr.mxu0 %v1556_v0 }
 0x466   :  { %1407 = vmatpush3.msra.mxu0 %v1678_v36 }
 0x467   :  { %1408 = vmatprep.subr.mxu0 %v1556_v0 }
 0x468   :  { %1409 = vmatpush3.msra.mxu0 %v1687_v37 }
 0x469   :  { %1410 = vmatprep.subr.mxu0 %v1556_v0 }
 0x46a   :  { %1411 = vmatpush3.msra.mxu0 %v1696_v38  ;;  %v868_v38 = vld [vmem:[%s2043_s4 + $0x40] sm:$0xff] }
 0x46b   :  { %1412 = vmatprep.subr.mxu0 %v1556_v0 }
 0x46c   :  { %1413 = vmatpush3.msra.mxu0 %v1705_v39  ;;  %v867_v39 = vld [vmem:[%s2043_s4 + $0x38] sm:$0xff] }
 0x46d   :  { %1414 = vmatprep.subr.mxu0 %v1556_v0 }
 0x46e   :  { %1415 = vmatpush3.msra.mxu0 %v1714_v40  ;;  %v866_v40 = vld [vmem:[%s2043_s4 + $0x30] sm:$0xff] }
 0x46f   :  { %1416 = vmatprep.subr.mxu0 %v1556_v0 }
 0x470   :  { %1417 = vmatpush3.msra.mxu0 %v1723_v41  ;;  %v865_v41 = vld [vmem:[%s2043_s4 + $0x28] sm:$0xff] }
 0x471   :  { %1418 = vmatprep.subr.mxu0 %v1556_v0 }
 0x472   :  { %1419 = vmatpush3.msra.mxu0 %v1732_v42  ;;  %v864_v42 = vld [vmem:[%s2043_s4 + $0x20] sm:$0xff]  ;;  %s1524_s4 = scalar_lea.vmem %s962_s22, 32 }
 0x473   :  { %p1525_p10 = scmp.ne.s32.totalorder %s962_s22, %s1524_s4  ;;  %p1530_p12 = scmp.lt.s32.totalorder %s1524_s4, %s1524_s4 }
 0x475   :  { %p1531_p13 = por %p1530_p12, %p1529_p11 }
 0x477   :  { %p1532_p0 = pnand %p1531_p13, %p1525_p10 }
 0x513   :  { %v702_v7 = vpop.f32.mrf.mxu0 }
 0x514   :  { %v706_v8 = vadd.f32 %v702_v7, %v635_v6 }
 0x515   :  { %v1352_v14 = vpop.f32.mrf.mxu0 }
 0x516   :  { %1478 = vtanh.f32 %v706_v8 }
 0x523   :  { %v1479_v22 = vpop.eup %1478 }
 0x524   :  { %1386 = vmatmul.mubr.f32.vlgmr.msra.gmra.mxu1 %v1479_v22 }
 0x525   :  { %1455 = vmatprep.mubr.msk.f32.mxu1 %vm1558_vm0, %v1556_v0  ;;  %1424 = vmatpush3.msra.mxu1 %v875_v26 }
 0x526   :  { %1425 = vmatprep.subr.mxu1 %v1556_v0 }
 0x527   :  { %1426 = vmatpush3.msra.mxu1 %v874_v27 }
 0x528   :  { %1427 = vmatprep.subr.mxu1 %v1556_v0 }
 0x529   :  { %1428 = vmatpush3.msra.mxu1 %v873_v28 }
 0x52a   :  { %1429 = vmatprep.subr.mxu1 %v1556_v0 }
 0x52b   :  { %1430 = vmatpush3.msra.mxu1 %v872_v29 }
 0x52c   :  { %1431 = vmatprep.subr.mxu1 %v1556_v0 }
 0x52d   :  { %1432 = vmatpush3.msra.mxu1 %v871_v30 }
 0x52e   :  { %1433 = vmatprep.subr.mxu1 %v1556_v0 }
 0x52f   :  { %1434 = vmatpush3.msra.mxu1 %v870_v31 }
 0x530   :  { %1435 = vmatprep.subr.mxu1 %v1556_v0 }
 0x531   :  { %1436 = vmatpush3.msra.mxu1 %v869_v32 }
 0x532   :  { %1437 = vmatprep.subr.mxu1 %v1556_v0 }
 0x533   :  { %1438 = vmatpush3.msra.mxu1 %v868_v38 }
 0x534   :  { %1439 = vmatprep.subr.mxu1 %v1556_v0 }
 0x535   :  { %1440 = vmatpush3.msra.mxu1 %v867_v39 }
 0x536   :  { %1441 = vmatprep.subr.mxu1 %v1556_v0 }
 0x537   :  { %1442 = vmatpush3.msra.mxu1 %v866_v40 }
 0x538   :  { %1443 = vmatprep.subr.mxu1 %v1556_v0 }
 0x539   :  { %1444 = vmatpush3.msra.mxu1 %v865_v41 }
 0x53a   :  { %1445 = vmatprep.subr.mxu1 %v1556_v0 }
 0x53b   :  { %1446 = vmatpush3.msra.mxu1 %v864_v42 }
 0x53c   :  { %1447 = vmatprep.subr.mxu1 %v1556_v0 }
 0x53d   :  { %1448 = vmatpush3.msra.mxu1 %v863_v43 }
 0x53e   :  { %1449 = vmatprep.subr.mxu1 %v1556_v0 }
 0x53f   :  { %1450 = vmatpush3.msra.mxu1 %v862_v44 }
 0x540   :  { %1451 = vmatprep.subr.mxu1 %v1556_v0 }
 0x541   :  { %1452 = vmatpush3.msra.mxu1 %v861_v45 }
 0x542   :  { %1453 = vmatprep.subr.mxu1 %v1556_v0 }
 0x543   :  { %1454 = vmatpush3.msra.mxu1 %v860_v46 }
 0x5e4   :  { %v776_v34 = vpop.f32.mrf.mxu1 }
 0x5e5   :  { %v780_v35 = vadd.f32 %v776_v34, %v709_v33 }
 0x5e6   :  { %v1387_v36 = vpop.f32.mrf.mxu1 }
 0x5e7   :  { %1480 = vtanh.f32 %v780_v35 }
 0x5f4   :  { %v1481_v37 = vpop.eup %1480 }
 0x5f5   :  { %1421 = vmatmul.mubr.f32.vlgmr.msra.gmra.mxu0 %v1481_v37 }
 0x6b5   :  { %v850_v48 = vpop.f32.mrf.mxu0 }
 0x6b6   :  { %v854_v49 = vadd.f32 %v850_v48, %v783_v47 }
 0x6b7   :  { %v1422_v50 = vpop.f32.mrf.mxu0 }
 0x6b8   :  { %1482 = vtanh.f32 %v854_v49 }
 0x6c5   :  { %v1483_v51 = vpop.eup %1482 }
 0x6c6   :  { %856 = vst [vmem:[#allocation2] sm:$0x3] %v1483_v51  ;;  %1456 = vmatmul.mubr.f32.vlgmr.msra.gmra.mxu1 %v1483_v51 }
 0x786   :  { %v949_v0 = vpop.f32.mrf.mxu1 }
 0x787   :  { %v950_v53 = vadd.f32 %v978_v52, %v949_v0 }
 0x788   :  { %v1457_v54 = vpop.f32.mrf.mxu1 }
 0x789   :  { %954 = vst.msk [vmem:[#allocation9] sm:$0x3] %vm953_vm2, %v950_v53 }
 0x78a   :  { %1535 = shalt.err (!%p1532_p0)
}
 0x78b   :  { %964 = dma.vmem_to_hbm [thread:$0]  %s962_s22, 32, %s2045_s6, [#allocation6]  }
 0x78c   :  { %1548 = dma.done.wait [#allocation6], 32  }
 0x78d   :  { %1549 = vsyncadd [#allocation6], 4294967264 }
 0x78e   :  { %968 = vsyncpa [#allocation5], 1 }
 0x78f   :  { %969 = vsyncpa [#allocation8], 1 }
 0x790   :  { %970 = vsyncpa [#allocation6], 1 }

</bundles_post_ra>
